<compile_context>
chip_gen: v7x
topology: tpu7x:2x2x1
jax: 0.10.0
libtpu: 0.0.40
codegen_flags: <defaults>
</compile_context>

<pallas_src>
import functools

import jax
import jax.numpy as jnp
from jax.experimental import pallas as pl
from jax.experimental.pallas import tpu as pltpu


def _round_up(v, m):
    return ((v + m - 1) // m) * m


def _pick_time_chunk(s, target=16):
    t = min(s, target)
    while s % t:
        t -= 1
    return t


def _pick_batch_block(bp, target=128):
    bb = min(bp, target)
    while bp % bb:
        bb -= 8
    return max(bb, 8)


def _pack_gate_cols(w, h, hp):
    """(rows, 4*h) -> (rows, 4*hp); gate k's h columns are placed at k*hp.

    hp is a multiple of 128, so each gate block starts on a lane boundary.
    Padding columns are zero, which keeps padded h/c lanes identically zero
    (sigmoid(0)*tanh(0) self-sustains zero state) and they never leak into the
    real lanes because the corresponding W_hh rows are also zero.
    """
    rows = w.shape[0]
    out = jnp.zeros((rows, 4 * hp), w.dtype)
    for k in range(4):
        out = out.at[:, k * hp:k * hp + h].set(w[:, k * h:(k + 1) * h])
    return out


def lstm_recurrent_kernel(gx_ref, w_hh_hbm, h_out_ref,
                          w_hh_vmem, dma_sem, h_ref, c_ref):
    """One grid step = one (batch block, time chunk); state persists in scratch."""
    s = pl.program_id(1)                 # time-chunk index (sequential axis)
    T = gx_ref.shape[0]                  # timesteps in this chunk (static)
    Hp = h_ref.shape[1]                  # padded hidden size (multiple of 128)

    @pl.when(s == 0)
    def _():
        # Stage the loop-invariant recurrent weight ONCE per batch block into
        # a single-buffered VMEM scratch (no double-buffered weight copy).
        cp = pltpu.make_async_copy(w_hh_hbm, w_hh_vmem, dma_sem.at[0])
        cp.start()
        cp.wait()
        # PyTorch default h0 = c0 = 0.
        h_ref[...] = jnp.zeros_like(h_ref)
        c_ref[...] = jnp.zeros_like(c_ref)

    w_hh = w_hh_vmem[...]                # (Hp, 4*Hp) in compute dtype

    def step(i, carry):
        gx_t = gx_ref[i]                 # (Bb, 4*Hp) f32: x_t @ W_ih^T + bias
        h_prev = h_ref[...]              # f32 state
        c_prev = c_ref[...]
        # Single per-step MXU matmul (input projection already hoisted out).
        gates = gx_t + jnp.dot(h_prev.astype(w_hh.dtype), w_hh,
                               preferred_element_type=jnp.float32)
        # Lane-aligned gate slices (each offset a multiple of 128).
        # PyTorch gate order: [i, f, g, o].  Gate math kept in f32.
        i_g = jax.nn.sigmoid(gates[:, 0 * Hp:1 * Hp])
        f_g = jax.nn.sigmoid(gates[:, 1 * Hp:2 * Hp])
        g_g = jnp.tanh(gates[:, 2 * Hp:3 * Hp])
        o_g = jax.nn.sigmoid(gates[:, 3 * Hp:4 * Hp])
        c_new = f_g * c_prev + i_g * g_g
        h_new = o_g * jnp.tanh(c_new)
        c_ref[...] = c_new
        h_ref[...] = h_new
        return carry

    jax.lax.fori_loop(0, T, step, 0, unroll=True)

    @pl.when(s == pl.num_programs(1) - 1)
    def _():
        h_out_ref[...] = h_ref[...]


@functools.partial(jax.jit, static_argnames=("compute_dtype", "time_chunk"))
def simple_lstm_forward(x, params, *, compute_dtype=jnp.float32, time_chunk=None):
    """x: (S, B, In) float32.  Returns (B, Out) float32 (== SimpleLSTM.forward)."""
    S, B, In = x.shape
    H = params["w_hh"].shape[1]

    Hp = _round_up(H, 128)       # lane-aligned gate blocks
    Bp = _round_up(B, 8)         # f32 sublane-aligned batch

    # ---- pack / pad weights (gate-major columns at stride Hp, zero-padded) ----
    w_ih_p = _pack_gate_cols(params["w_ih"].T, H, Hp)                    # (In, 4Hp)
    w_hh_p = jnp.zeros((Hp, 4 * Hp), jnp.float32)
    w_hh_p = w_hh_p.at[:H, :].set(_pack_gate_cols(params["w_hh"].T, H, Hp))
    bias_p = _pack_gate_cols((params["b_ih"] + params["b_hh"])[None, :], H, Hp)[0]

    # ---- hoisted input projection: one big batched matmul (not recurrent) ----
    x_p = jnp.zeros((S, Bp, In), x.dtype).at[:, :B, :].set(x)
    gx = jnp.einsum("sbi,ig->sbg",
                    x_p.astype(compute_dtype), w_ih_p.astype(compute_dtype),
                    preferred_element_type=jnp.float32)
    gx = gx + bias_p.astype(jnp.float32)[None, None, :]                  # (S, Bp, 4Hp)

    w_hh_c = w_hh_p.astype(compute_dtype)

    T = time_chunk if time_chunk is not None else _pick_time_chunk(S)
    assert S % T == 0
    Bb = _pick_batch_block(Bp)
    n_b, n_s = Bp // Bb, S // T

    grid_spec = pltpu.PrefetchScalarGridSpec(
        num_scalar_prefetch=0,
        grid=(n_b, n_s),
        in_specs=[
            # Pre-activations, streamed one (batch block, time chunk) at a time.
            pl.BlockSpec((T, Bb, 4 * Hp), lambda b, s: (s, b, 0)),
            # Recurrent weight: stays in HBM, manually staged once per batch block.
            pl.BlockSpec(memory_space=pl.ANY),
        ],
        out_specs=pl.BlockSpec((Bb, Hp), lambda b, s: (b, 0)),
        scratch_shapes=[
            pltpu.VMEM((Hp, 4 * Hp), compute_dtype),    # single-buffered W_hh
            pltpu.SemaphoreType.DMA((1,)),
            pltpu.VMEM((Bb, Hp), jnp.float32),          # h state (f32)
            pltpu.VMEM((Bb, Hp), jnp.float32),          # c state (f32)
        ],
    )

    h_last = pl.pallas_call(
        lstm_recurrent_kernel,
        out_shape=jax.ShapeDtypeStruct((Bp, Hp), jnp.float32),
        grid_spec=grid_spec,
        compiler_params=pltpu.CompilerParams(
            # Batch blocks are independent (v7x megacore); time is a recurrence.
            dimension_semantics=("parallel", "arbitrary")),
    )(gx, w_hh_c)

    # ---- final Linear on the last hidden state, outside the recurrent kernel ----
    h_T = h_last[:B, :H]
    return h_T @ params["w_lin"].T + params["b_lin"]


def reference_forward(x, params):
    """Pure-JAX reference (mirrors PyTorch nn.LSTM + nn.Linear)."""
    S, B, In = x.shape
    H = params["w_hh"].shape[1]

    def step(carry, x_t):
        h, c = carry
        gates = (x_t @ params["w_ih"].T + params["b_ih"]
                 + h @ params["w_hh"].T + params["b_hh"])
        i = jax.nn.sigmoid(gates[:, 0 * H:1 * H])
        f = jax.nn.sigmoid(gates[:, 1 * H:2 * H])
        g = jnp.tanh(gates[:, 2 * H:3 * H])
        o = jax.nn.sigmoid(gates[:, 3 * H:4 * H])
        c_new = f * c + i * g
        h_new = o * jnp.tanh(c_new)
        return (h_new, c_new), h_new

    h0 = jnp.zeros((B, H), jnp.float32)
    c0 = jnp.zeros((B, H), jnp.float32)
    (_, _), hs = jax.lax.scan(step, (h0, c0), x)
    return hs[-1] @ params["w_lin"].T + params["b_lin"]


def init_params(key, input_size, hidden_size, output_size):
    """Deterministic init (uniform +-1/sqrt(hidden), PyTorch-style)."""
    ks = jax.random.split(key, 6)
    bound = 1.0 / jnp.sqrt(hidden_size)
    u = lambda k, shape: jax.random.uniform(
        k, shape, jnp.float32, minval=-bound, maxval=bound)
    return {
        "w_ih": u(ks[0], (4 * hidden_size, input_size)),
        "w_hh": u(ks[1], (4 * hidden_size, hidden_size)),
        "b_ih": u(ks[2], (4 * hidden_size,)),
        "b_hh": u(ks[3], (4 * hidden_size,)),
        "w_lin": u(ks[4], (output_size, hidden_size)),
        "b_lin": u(ks[5], (output_size,)),
    }


if __name__ == "__main__":
    seq_len, batch, input_size, hidden_size, output_size = 8, 2, 16, 32, 8

    key = jax.random.PRNGKey(0)
    k_x, k_p = jax.random.split(key)
    x = jax.random.normal(k_x, (seq_len, batch, input_size), jnp.float32)
    params = init_params(k_p, input_size, hidden_size, output_size)

    ref = reference_forward(x, params)

    # f32 MXU-operand path.
    out = jax.block_until_ready(simple_lstm_forward(x, params))
    assert out.shape == (batch, output_size)
    assert jnp.allclose(out, ref, atol=1e-3, rtol=1e-3), "f32 mismatch vs reference"

    # bf16 MXU-operand path (v6e/v7x): bf16 matmul operands, f32 accumulation,
    # f32 gate math and c/h state -> looser tolerance.
    out_bf16 = jax.block_until_ready(
        simple_lstm_forward(x, params, compute_dtype=jnp.bfloat16))
    assert jnp.allclose(out_bf16, ref, atol=8e-2, rtol=8e-2), "bf16 mismatch vs reference"

    print("KERNEL_OK")
</pallas_src>

<mosaic_0001>
module attributes {stable_mosaic.version = 11 : i64} {
  func.func @lstm_recurrent_kernel(%arg0: i32, %arg1: i32, %arg2: memref<8x8x512xf32, #tpu.memory_space<vmem>>, %arg3: memref<128x512xf32, #tpu.memory_space<any>>, %arg4: memref<8x128xf32, #tpu.memory_space<vmem>>, %arg5: memref<128x512xf32, #tpu.memory_space<vmem>>, %arg6: memref<1x!tpu.dma_semaphore, #tpu.memory_space<semaphore_mem>>, %arg7: memref<8x128xf32, #tpu.memory_space<vmem>>, %arg8: memref<8x128xf32, #tpu.memory_space<vmem>>) attributes {dimension_semantics = [#tpu.dimension_semantics<parallel>, #tpu.dimension_semantics<arbitrary>], iteration_bounds = array<i64: 1, 1>, scalar_prefetch = 0 : i64, scratch_operands = 4 : i64, tpu.core_type = #tpu.core_type<tc>, window_params = [{transform_indices = @transform_0, window_bounds = array<i64: 8, 8, 512>}, {}, {transform_indices = @transform_2, window_bounds = array<i64: 8, 128>}]} {
    %c0_i32 = arith.constant 0 : i32
    %0 = arith.cmpi eq, %arg1, %c0_i32 : i32
    %1 = arith.extui %0 : i1 to i32
    %c0_i32_0 = arith.constant 0 : i32
    %2 = arith.cmpi ne, %1, %c0_i32_0 : i32
    scf.if %2 {
      %c0_i32_116 = arith.constant 0 : i32
      %279 = tpu.memref_slice %arg6[%c0_i32_116] : memref<1x!tpu.dma_semaphore, #tpu.memory_space<semaphore_mem>> -> memref<1x!tpu.dma_semaphore, #tpu.memory_space<semaphore_mem>>
      %280 = tpu.memref_squeeze %279 : memref<1x!tpu.dma_semaphore, #tpu.memory_space<semaphore_mem>> -> memref<!tpu.dma_semaphore, #tpu.memory_space<semaphore_mem>>
      tpu.enqueue_dma source(%arg3 : memref<128x512xf32, #tpu.memory_space<any>>) target(%arg5 : memref<128x512xf32, #tpu.memory_space<vmem>>) target_semaphore(%280 : memref<!tpu.dma_semaphore, #tpu.memory_space<semaphore_mem>>)
      %c0_i32_117 = arith.constant 0 : i32
      %281 = tpu.memref_slice %arg6[%c0_i32_117] : memref<1x!tpu.dma_semaphore, #tpu.memory_space<semaphore_mem>> -> memref<1x!tpu.dma_semaphore, #tpu.memory_space<semaphore_mem>>
      %282 = tpu.memref_squeeze %281 : memref<1x!tpu.dma_semaphore, #tpu.memory_space<semaphore_mem>> -> memref<!tpu.dma_semaphore, #tpu.memory_space<semaphore_mem>>
      tpu.wait_dma2 semaphore(%282 : memref<!tpu.dma_semaphore, #tpu.memory_space<semaphore_mem>>) src(%arg3 : memref<128x512xf32, #tpu.memory_space<any>>) dst(%arg5 : memref<128x512xf32, #tpu.memory_space<vmem>>)
      %cst_118 = arith.constant 0.000000e+00 : f32
      %283 = vector.broadcast %cst_118 : f32 to vector<8x128xf32>
      %c0_119 = arith.constant 0 : index
      %c0_120 = arith.constant 0 : index
      %284 = vector.load %arg7[%c0_119, %c0_120] : memref<8x128xf32, #tpu.memory_space<vmem>>, vector<8x128xf32>
      tpu.vector_store %arg7[%c0_119, %c0_120], %283 {strides = array<i32>} : memref<8x128xf32, #tpu.memory_space<vmem>>, vector<8x128xf32>,
      %cst_121 = arith.constant 0.000000e+00 : f32
      %285 = vector.broadcast %cst_121 : f32 to vector<8x128xf32>
      %c0_122 = arith.constant 0 : index
      %c0_123 = arith.constant 0 : index
      %286 = vector.load %arg8[%c0_122, %c0_123] : memref<8x128xf32, #tpu.memory_space<vmem>>, vector<8x128xf32>
      tpu.vector_store %arg8[%c0_122, %c0_123], %285 {strides = array<i32>} : memref<8x128xf32, #tpu.memory_space<vmem>>, vector<8x128xf32>,
    } else {
    }
    %c0 = arith.constant 0 : index
    %c0_1 = arith.constant 0 : index
    %3 = vector.load %arg5[%c0, %c0_1] : memref<128x512xf32, #tpu.memory_space<vmem>>, vector<128x512xf32>
    %c0_i32_2 = arith.constant 0 : i32
    %4 = arith.index_cast %c0_i32_2 : i32 to index
    %c0_3 = arith.constant 0 : index
    %c0_4 = arith.constant 0 : index
    %5 = vector.load %arg2[%4, %c0_3, %c0_4] : memref<8x8x512xf32, #tpu.memory_space<vmem>>, vector<1x8x512xf32>
    %6 = vector.shape_cast %5 : vector<1x8x512xf32> to vector<8x512xf32>
    %c0_5 = arith.constant 0 : index
    %c0_6 = arith.constant 0 : index
    %7 = vector.load %arg7[%c0_5, %c0_6] : memref<8x128xf32, #tpu.memory_space<vmem>>, vector<8x128xf32>
    %c0_7 = arith.constant 0 : index
    %c0_8 = arith.constant 0 : index
    %8 = vector.load %arg8[%c0_7, %c0_8] : memref<8x128xf32, #tpu.memory_space<vmem>>, vector<8x128xf32>
    %cst = arith.constant dense<0.000000e+00> : vector<8x512xf32>
    %9 = tpu.matmul %7, %3, %cst {dimension_numbers = #tpu.dot_dimension_numbers<[1], [0], [0], [1], [0, 0, 1, 1], [], []>} : vector<8x128xf32>, vector<128x512xf32>, vector<8x512xf32> -> vector<8x512xf32>
    %10 = arith.addf %6, %9 : vector<8x512xf32>
    %11 = vector.extract_strided_slice %10 {offsets = [0, 0], sizes = [8, 128], strides = [1, 1]} : vector<8x512xf32> to vector<8x128xf32>
    %12 = arith.negf %11 : vector<8x128xf32>
    %13 = math.exp %12 : vector<8x128xf32>
    %cst_9 = arith.constant 1.000000e+00 : f32
    %14 = vector.broadcast %cst_9 : f32 to vector<8x128xf32>
    %15 = arith.addf %14, %13 : vector<8x128xf32>
    %16 = arith.divf %14, %15 : vector<8x128xf32>
    %17 = vector.extract_strided_slice %10 {offsets = [0, 128], sizes = [8, 128], strides = [1, 1]} : vector<8x512xf32> to vector<8x128xf32>
    %18 = arith.negf %17 : vector<8x128xf32>
    %19 = math.exp %18 : vector<8x128xf32>
    %cst_10 = arith.constant 1.000000e+00 : f32
    %20 = vector.broadcast %cst_10 : f32 to vector<8x128xf32>
    %21 = arith.addf %20, %19 : vector<8x128xf32>
    %22 = arith.divf %20, %21 : vector<8x128xf32>
    %23 = vector.extract_strided_slice %10 {offsets = [0, 256], sizes = [8, 128], strides = [1, 1]} : vector<8x512xf32> to vector<8x128xf32>
    %24 = math.tanh %23 : vector<8x128xf32>
    %25 = vector.extract_strided_slice %10 {offsets = [0, 384], sizes = [8, 128], strides = [1, 1]} : vector<8x512xf32> to vector<8x128xf32>
    %26 = arith.negf %25 : vector<8x128xf32>
    %27 = math.exp %26 : vector<8x128xf32>
    %cst_11 = arith.constant 1.000000e+00 : f32
    %28 = vector.broadcast %cst_11 : f32 to vector<8x128xf32>
    %29 = arith.addf %28, %27 : vector<8x128xf32>
    %30 = arith.divf %28, %29 : vector<8x128xf32>
    %31 = arith.mulf %22, %8 : vector<8x128xf32>
    %32 = arith.mulf %16, %24 : vector<8x128xf32>
    %33 = arith.addf %31, %32 : vector<8x128xf32>
    %34 = math.tanh %33 : vector<8x128xf32>
    %35 = arith.mulf %30, %34 : vector<8x128xf32>
    %c0_12 = arith.constant 0 : index
    %c0_13 = arith.constant 0 : index
    %36 = vector.load %arg8[%c0_12, %c0_13] : memref<8x128xf32, #tpu.memory_space<vmem>>, vector<8x128xf32>
    tpu.vector_store %arg8[%c0_12, %c0_13], %33 {strides = array<i32>} : memref<8x128xf32, #tpu.memory_space<vmem>>, vector<8x128xf32>,
    %c0_14 = arith.constant 0 : index
    %c0_15 = arith.constant 0 : index
    %37 = vector.load %arg7[%c0_14, %c0_15] : memref<8x128xf32, #tpu.memory_space<vmem>>, vector<8x128xf32>
    tpu.vector_store %arg7[%c0_14, %c0_15], %35 {strides = array<i32>} : memref<8x128xf32, #tpu.memory_space<vmem>>, vector<8x128xf32>,
    %c1_i32 = arith.constant 1 : i32
    %38 = arith.index_cast %c1_i32 : i32 to index
    %c0_16 = arith.constant 0 : index
    %c0_17 = arith.constant 0 : index
    %39 = vector.load %arg2[%38, %c0_16, %c0_17] : memref<8x8x512xf32, #tpu.memory_space<vmem>>, vector<1x8x512xf32>
    %40 = vector.shape_cast %39 : vector<1x8x512xf32> to vector<8x512xf32>
    %c0_18 = arith.constant 0 : index
    %c0_19 = arith.constant 0 : index
    %41 = vector.load %arg7[%c0_18, %c0_19] : memref<8x128xf32, #tpu.memory_space<vmem>>, vector<8x128xf32>
    %c0_20 = arith.constant 0 : index
    %c0_21 = arith.constant 0 : index
    %42 = vector.load %arg8[%c0_20, %c0_21] : memref<8x128xf32, #tpu.memory_space<vmem>>, vector<8x128xf32>
    %cst_22 = arith.constant dense<0.000000e+00> : vector<8x512xf32>
    %43 = tpu.matmul %41, %3, %cst_22 {dimension_numbers = #tpu.dot_dimension_numbers<[1], [0], [0], [1], [0, 0, 1, 1], [], []>} : vector<8x128xf32>, vector<128x512xf32>, vector<8x512xf32> -> vector<8x512xf32>
    %44 = arith.addf %40, %43 : vector<8x512xf32>
    %45 = vector.extract_strided_slice %44 {offsets = [0, 0], sizes = [8, 128], strides = [1, 1]} : vector<8x512xf32> to vector<8x128xf32>
    %46 = arith.negf %45 : vector<8x128xf32>
    %47 = math.exp %46 : vector<8x128xf32>
    %cst_23 = arith.constant 1.000000e+00 : f32
    %48 = vector.broadcast %cst_23 : f32 to vector<8x128xf32>
    %49 = arith.addf %48, %47 : vector<8x128xf32>
    %50 = arith.divf %48, %49 : vector<8x128xf32>
    %51 = vector.extract_strided_slice %44 {offsets = [0, 128], sizes = [8, 128], strides = [1, 1]} : vector<8x512xf32> to vector<8x128xf32>
    %52 = arith.negf %51 : vector<8x128xf32>
    %53 = math.exp %52 : vector<8x128xf32>
    %cst_24 = arith.constant 1.000000e+00 : f32
    %54 = vector.broadcast %cst_24 : f32 to vector<8x128xf32>
    %55 = arith.addf %54, %53 : vector<8x128xf32>
    %56 = arith.divf %54, %55 : vector<8x128xf32>
    %57 = vector.extract_strided_slice %44 {offsets = [0, 256], sizes = [8, 128], strides = [1, 1]} : vector<8x512xf32> to vector<8x128xf32>
    %58 = math.tanh %57 : vector<8x128xf32>
    %59 = vector.extract_strided_slice %44 {offsets = [0, 384], sizes = [8, 128], strides = [1, 1]} : vector<8x512xf32> to vector<8x128xf32>
    %60 = arith.negf %59 : vector<8x128xf32>
    %61 = math.exp %60 : vector<8x128xf32>
    %cst_25 = arith.constant 1.000000e+00 : f32
    %62 = vector.broadcast %cst_25 : f32 to vector<8x128xf32>
    %63 = arith.addf %62, %61 : vector<8x128xf32>
    %64 = arith.divf %62, %63 : vector<8x128xf32>
    %65 = arith.mulf %56, %42 : vector<8x128xf32>
    %66 = arith.mulf %50, %58 : vector<8x128xf32>
    %67 = arith.addf %65, %66 : vector<8x128xf32>
    %68 = math.tanh %67 : vector<8x128xf32>
    %69 = arith.mulf %64, %68 : vector<8x128xf32>
    %c0_26 = arith.constant 0 : index
    %c0_27 = arith.constant 0 : index
    %70 = vector.load %arg8[%c0_26, %c0_27] : memref<8x128xf32, #tpu.memory_space<vmem>>, vector<8x128xf32>
    tpu.vector_store %arg8[%c0_26, %c0_27], %67 {strides = array<i32>} : memref<8x128xf32, #tpu.memory_space<vmem>>, vector<8x128xf32>,
    %c0_28 = arith.constant 0 : index
    %c0_29 = arith.constant 0 : index
    %71 = vector.load %arg7[%c0_28, %c0_29] : memref<8x128xf32, #tpu.memory_space<vmem>>, vector<8x128xf32>
    tpu.vector_store %arg7[%c0_28, %c0_29], %69 {strides = array<i32>} : memref<8x128xf32, #tpu.memory_space<vmem>>, vector<8x128xf32>,
    %c2_i32 = arith.constant 2 : i32
    %72 = arith.index_cast %c2_i32 : i32 to index
    %c0_30 = arith.constant 0 : index
    %c0_31 = arith.constant 0 : index
    %73 = vector.load %arg2[%72, %c0_30, %c0_31] : memref<8x8x512xf32, #tpu.memory_space<vmem>>, vector<1x8x512xf32>
    %74 = vector.shape_cast %73 : vector<1x8x512xf32> to vector<8x512xf32>
    %c0_32 = arith.constant 0 : index
    %c0_33 = arith.constant 0 : index
    %75 = vector.load %arg7[%c0_32, %c0_33] : memref<8x128xf32, #tpu.memory_space<vmem>>, vector<8x128xf32>
    %c0_34 = arith.constant 0 : index
    %c0_35 = arith.constant 0 : index
    %76 = vector.load %arg8[%c0_34, %c0_35] : memref<8x128xf32, #tpu.memory_space<vmem>>, vector<8x128xf32>
    %cst_36 = arith.constant dense<0.000000e+00> : vector<8x512xf32>
    %77 = tpu.matmul %75, %3, %cst_36 {dimension_numbers = #tpu.dot_dimension_numbers<[1], [0], [0], [1], [0, 0, 1, 1], [], []>} : vector<8x128xf32>, vector<128x512xf32>, vector<8x512xf32> -> vector<8x512xf32>
    %78 = arith.addf %74, %77 : vector<8x512xf32>
    %79 = vector.extract_strided_slice %78 {offsets = [0, 0], sizes = [8, 128], strides = [1, 1]} : vector<8x512xf32> to vector<8x128xf32>
    %80 = arith.negf %79 : vector<8x128xf32>
    %81 = math.exp %80 : vector<8x128xf32>
    %cst_37 = arith.constant 1.000000e+00 : f32
    %82 = vector.broadcast %cst_37 : f32 to vector<8x128xf32>
    %83 = arith.addf %82, %81 : vector<8x128xf32>
    %84 = arith.divf %82, %83 : vector<8x128xf32>
    %85 = vector.extract_strided_slice %78 {offsets = [0, 128], sizes = [8, 128], strides = [1, 1]} : vector<8x512xf32> to vector<8x128xf32>
    %86 = arith.negf %85 : vector<8x128xf32>
    %87 = math.exp %86 : vector<8x128xf32>
    %cst_38 = arith.constant 1.000000e+00 : f32
    %88 = vector.broadcast %cst_38 : f32 to vector<8x128xf32>
    %89 = arith.addf %88, %87 : vector<8x128xf32>
    %90 = arith.divf %88, %89 : vector<8x128xf32>
    %91 = vector.extract_strided_slice %78 {offsets = [0, 256], sizes = [8, 128], strides = [1, 1]} : vector<8x512xf32> to vector<8x128xf32>
    %92 = math.tanh %91 : vector<8x128xf32>
    %93 = vector.extract_strided_slice %78 {offsets = [0, 384], sizes = [8, 128], strides = [1, 1]} : vector<8x512xf32> to vector<8x128xf32>
    %94 = arith.negf %93 : vector<8x128xf32>
    %95 = math.exp %94 : vector<8x128xf32>
    %cst_39 = arith.constant 1.000000e+00 : f32
    %96 = vector.broadcast %cst_39 : f32 to vector<8x128xf32>
    %97 = arith.addf %96, %95 : vector<8x128xf32>
    %98 = arith.divf %96, %97 : vector<8x128xf32>
    %99 = arith.mulf %90, %76 : vector<8x128xf32>
    %100 = arith.mulf %84, %92 : vector<8x128xf32>
    %101 = arith.addf %99, %100 : vector<8x128xf32>
    %102 = math.tanh %101 : vector<8x128xf32>
    %103 = arith.mulf %98, %102 : vector<8x128xf32>
    %c0_40 = arith.constant 0 : index
    %c0_41 = arith.constant 0 : index
    %104 = vector.load %arg8[%c0_40, %c0_41] : memref<8x128xf32, #tpu.memory_space<vmem>>, vector<8x128xf32>
    tpu.vector_store %arg8[%c0_40, %c0_41], %101 {strides = array<i32>} : memref<8x128xf32, #tpu.memory_space<vmem>>, vector<8x128xf32>,
    %c0_42 = arith.constant 0 : index
    %c0_43 = arith.constant 0 : index
    %105 = vector.load %arg7[%c0_42, %c0_43] : memref<8x128xf32, #tpu.memory_space<vmem>>, vector<8x128xf32>
    tpu.vector_store %arg7[%c0_42, %c0_43], %103 {strides = array<i32>} : memref<8x128xf32, #tpu.memory_space<vmem>>, vector<8x128xf32>,
    %c3_i32 = arith.constant 3 : i32
    %106 = arith.index_cast %c3_i32 : i32 to index
    %c0_44 = arith.constant 0 : index
    %c0_45 = arith.constant 0 : index
    %107 = vector.load %arg2[%106, %c0_44, %c0_45] : memref<8x8x512xf32, #tpu.memory_space<vmem>>, vector<1x8x512xf32>
    %108 = vector.shape_cast %107 : vector<1x8x512xf32> to vector<8x512xf32>
    %c0_46 = arith.constant 0 : index
    %c0_47 = arith.constant 0 : index
    %109 = vector.load %arg7[%c0_46, %c0_47] : memref<8x128xf32, #tpu.memory_space<vmem>>, vector<8x128xf32>
    %c0_48 = arith.constant 0 : index
    %c0_49 = arith.constant 0 : index
    %110 = vector.load %arg8[%c0_48, %c0_49] : memref<8x128xf32, #tpu.memory_space<vmem>>, vector<8x128xf32>
    %cst_50 = arith.constant dense<0.000000e+00> : vector<8x512xf32>
    %111 = tpu.matmul %109, %3, %cst_50 {dimension_numbers = #tpu.dot_dimension_numbers<[1], [0], [0], [1], [0, 0, 1, 1], [], []>} : vector<8x128xf32>, vector<128x512xf32>, vector<8x512xf32> -> vector<8x512xf32>
    %112 = arith.addf %108, %111 : vector<8x512xf32>
    %113 = vector.extract_strided_slice %112 {offsets = [0, 0], sizes = [8, 128], strides = [1, 1]} : vector<8x512xf32> to vector<8x128xf32>
    %114 = arith.negf %113 : vector<8x128xf32>
    %115 = math.exp %114 : vector<8x128xf32>
    %cst_51 = arith.constant 1.000000e+00 : f32
    %116 = vector.broadcast %cst_51 : f32 to vector<8x128xf32>
    %117 = arith.addf %116, %115 : vector<8x128xf32>
    %118 = arith.divf %116, %117 : vector<8x128xf32>
    %119 = vector.extract_strided_slice %112 {offsets = [0, 128], sizes = [8, 128], strides = [1, 1]} : vector<8x512xf32> to vector<8x128xf32>
    %120 = arith.negf %119 : vector<8x128xf32>
    %121 = math.exp %120 : vector<8x128xf32>
    %cst_52 = arith.constant 1.000000e+00 : f32
    %122 = vector.broadcast %cst_52 : f32 to vector<8x128xf32>
    %123 = arith.addf %122, %121 : vector<8x128xf32>
    %124 = arith.divf %122, %123 : vector<8x128xf32>
    %125 = vector.extract_strided_slice %112 {offsets = [0, 256], sizes = [8, 128], strides = [1, 1]} : vector<8x512xf32> to vector<8x128xf32>
    %126 = math.tanh %125 : vector<8x128xf32>
    %127 = vector.extract_strided_slice %112 {offsets = [0, 384], sizes = [8, 128], strides = [1, 1]} : vector<8x512xf32> to vector<8x128xf32>
    %128 = arith.negf %127 : vector<8x128xf32>
    %129 = math.exp %128 : vector<8x128xf32>
    %cst_53 = arith.constant 1.000000e+00 : f32
    %130 = vector.broadcast %cst_53 : f32 to vector<8x128xf32>
    %131 = arith.addf %130, %129 : vector<8x128xf32>
    %132 = arith.divf %130, %131 : vector<8x128xf32>
    %133 = arith.mulf %124, %110 : vector<8x128xf32>
    %134 = arith.mulf %118, %126 : vector<8x128xf32>
    %135 = arith.addf %133, %134 : vector<8x128xf32>
    %136 = math.tanh %135 : vector<8x128xf32>
    %137 = arith.mulf %132, %136 : vector<8x128xf32>
    %c0_54 = arith.constant 0 : index
    %c0_55 = arith.constant 0 : index
    %138 = vector.load %arg8[%c0_54, %c0_55] : memref<8x128xf32, #tpu.memory_space<vmem>>, vector<8x128xf32>
    tpu.vector_store %arg8[%c0_54, %c0_55], %135 {strides = array<i32>} : memref<8x128xf32, #tpu.memory_space<vmem>>, vector<8x128xf32>,
    %c0_56 = arith.constant 0 : index
    %c0_57 = arith.constant 0 : index
    %139 = vector.load %arg7[%c0_56, %c0_57] : memref<8x128xf32, #tpu.memory_space<vmem>>, vector<8x128xf32>
    tpu.vector_store %arg7[%c0_56, %c0_57], %137 {strides = array<i32>} : memref<8x128xf32, #tpu.memory_space<vmem>>, vector<8x128xf32>,
    %c4_i32 = arith.constant 4 : i32
    %140 = arith.index_cast %c4_i32 : i32 to index
    %c0_58 = arith.constant 0 : index
    %c0_59 = arith.constant 0 : index
    %141 = vector.load %arg2[%140, %c0_58, %c0_59] : memref<8x8x512xf32, #tpu.memory_space<vmem>>, vector<1x8x512xf32>
    %142 = vector.shape_cast %141 : vector<1x8x512xf32> to vector<8x512xf32>
    %c0_60 = arith.constant 0 : index
    %c0_61 = arith.constant 0 : index
    %143 = vector.load %arg7[%c0_60, %c0_61] : memref<8x128xf32, #tpu.memory_space<vmem>>, vector<8x128xf32>
    %c0_62 = arith.constant 0 : index
    %c0_63 = arith.constant 0 : index
    %144 = vector.load %arg8[%c0_62, %c0_63] : memref<8x128xf32, #tpu.memory_space<vmem>>, vector<8x128xf32>
    %cst_64 = arith.constant dense<0.000000e+00> : vector<8x512xf32>
    %145 = tpu.matmul %143, %3, %cst_64 {dimension_numbers = #tpu.dot_dimension_numbers<[1], [0], [0], [1], [0, 0, 1, 1], [], []>} : vector<8x128xf32>, vector<128x512xf32>, vector<8x512xf32> -> vector<8x512xf32>
    %146 = arith.addf %142, %145 : vector<8x512xf32>
    %147 = vector.extract_strided_slice %146 {offsets = [0, 0], sizes = [8, 128], strides = [1, 1]} : vector<8x512xf32> to vector<8x128xf32>
    %148 = arith.negf %147 : vector<8x128xf32>
    %149 = math.exp %148 : vector<8x128xf32>
    %cst_65 = arith.constant 1.000000e+00 : f32
    %150 = vector.broadcast %cst_65 : f32 to vector<8x128xf32>
    %151 = arith.addf %150, %149 : vector<8x128xf32>
    %152 = arith.divf %150, %151 : vector<8x128xf32>
    %153 = vector.extract_strided_slice %146 {offsets = [0, 128], sizes = [8, 128], strides = [1, 1]} : vector<8x512xf32> to vector<8x128xf32>
    %154 = arith.negf %153 : vector<8x128xf32>
    %155 = math.exp %154 : vector<8x128xf32>
    %cst_66 = arith.constant 1.000000e+00 : f32
    %156 = vector.broadcast %cst_66 : f32 to vector<8x128xf32>
    %157 = arith.addf %156, %155 : vector<8x128xf32>
    %158 = arith.divf %156, %157 : vector<8x128xf32>
    %159 = vector.extract_strided_slice %146 {offsets = [0, 256], sizes = [8, 128], strides = [1, 1]} : vector<8x512xf32> to vector<8x128xf32>
    %160 = math.tanh %159 : vector<8x128xf32>
    %161 = vector.extract_strided_slice %146 {offsets = [0, 384], sizes = [8, 128], strides = [1, 1]} : vector<8x512xf32> to vector<8x128xf32>
    %162 = arith.negf %161 : vector<8x128xf32>
    %163 = math.exp %162 : vector<8x128xf32>
    %cst_67 = arith.constant 1.000000e+00 : f32
    %164 = vector.broadcast %cst_67 : f32 to vector<8x128xf32>
    %165 = arith.addf %164, %163 : vector<8x128xf32>
    %166 = arith.divf %164, %165 : vector<8x128xf32>
    %167 = arith.mulf %158, %144 : vector<8x128xf32>
    %168 = arith.mulf %152, %160 : vector<8x128xf32>
    %169 = arith.addf %167, %168 : vector<8x128xf32>
    %170 = math.tanh %169 : vector<8x128xf32>
    %171 = arith.mulf %166, %170 : vector<8x128xf32>
    %c0_68 = arith.constant 0 : index
    %c0_69 = arith.constant 0 : index
    %172 = vector.load %arg8[%c0_68, %c0_69] : memref<8x128xf32, #tpu.memory_space<vmem>>, vector<8x128xf32>
    tpu.vector_store %arg8[%c0_68, %c0_69], %169 {strides = array<i32>} : memref<8x128xf32, #tpu.memory_space<vmem>>, vector<8x128xf32>,
    %c0_70 = arith.constant 0 : index
    %c0_71 = arith.constant 0 : index
    %173 = vector.load %arg7[%c0_70, %c0_71] : memref<8x128xf32, #tpu.memory_space<vmem>>, vector<8x128xf32>
    tpu.vector_store %arg7[%c0_70, %c0_71], %171 {strides = array<i32>} : memref<8x128xf32, #tpu.memory_space<vmem>>, vector<8x128xf32>,
    %c5_i32 = arith.constant 5 : i32
    %174 = arith.index_cast %c5_i32 : i32 to index
    %c0_72 = arith.constant 0 : index
    %c0_73 = arith.constant 0 : index
    %175 = vector.load %arg2[%174, %c0_72, %c0_73] : memref<8x8x512xf32, #tpu.memory_space<vmem>>, vector<1x8x512xf32>
    %176 = vector.shape_cast %175 : vector<1x8x512xf32> to vector<8x512xf32>
    %c0_74 = arith.constant 0 : index
    %c0_75 = arith.constant 0 : index
    %177 = vector.load %arg7[%c0_74, %c0_75] : memref<8x128xf32, #tpu.memory_space<vmem>>, vector<8x128xf32>
    %c0_76 = arith.constant 0 : index
    %c0_77 = arith.constant 0 : index
    %178 = vector.load %arg8[%c0_76, %c0_77] : memref<8x128xf32, #tpu.memory_space<vmem>>, vector<8x128xf32>
    %cst_78 = arith.constant dense<0.000000e+00> : vector<8x512xf32>
    %179 = tpu.matmul %177, %3, %cst_78 {dimension_numbers = #tpu.dot_dimension_numbers<[1], [0], [0], [1], [0, 0, 1, 1], [], []>} : vector<8x128xf32>, vector<128x512xf32>, vector<8x512xf32> -> vector<8x512xf32>
    %180 = arith.addf %176, %179 : vector<8x512xf32>
    %181 = vector.extract_strided_slice %180 {offsets = [0, 0], sizes = [8, 128], strides = [1, 1]} : vector<8x512xf32> to vector<8x128xf32>
    %182 = arith.negf %181 : vector<8x128xf32>
    %183 = math.exp %182 : vector<8x128xf32>
    %cst_79 = arith.constant 1.000000e+00 : f32
    %184 = vector.broadcast %cst_79 : f32 to vector<8x128xf32>
    %185 = arith.addf %184, %183 : vector<8x128xf32>
    %186 = arith.divf %184, %185 : vector<8x128xf32>
    %187 = vector.extract_strided_slice %180 {offsets = [0, 128], sizes = [8, 128], strides = [1, 1]} : vector<8x512xf32> to vector<8x128xf32>
    %188 = arith.negf %187 : vector<8x128xf32>
    %189 = math.exp %188 : vector<8x128xf32>
    %cst_80 = arith.constant 1.000000e+00 : f32
    %190 = vector.broadcast %cst_80 : f32 to vector<8x128xf32>
    %191 = arith.addf %190, %189 : vector<8x128xf32>
    %192 = arith.divf %190, %191 : vector<8x128xf32>
    %193 = vector.extract_strided_slice %180 {offsets = [0, 256], sizes = [8, 128], strides = [1, 1]} : vector<8x512xf32> to vector<8x128xf32>
    %194 = math.tanh %193 : vector<8x128xf32>
    %195 = vector.extract_strided_slice %180 {offsets = [0, 384], sizes = [8, 128], strides = [1, 1]} : vector<8x512xf32> to vector<8x128xf32>
    %196 = arith.negf %195 : vector<8x128xf32>
    %197 = math.exp %196 : vector<8x128xf32>
    %cst_81 = arith.constant 1.000000e+00 : f32
    %198 = vector.broadcast %cst_81 : f32 to vector<8x128xf32>
    %199 = arith.addf %198, %197 : vector<8x128xf32>
    %200 = arith.divf %198, %199 : vector<8x128xf32>
    %201 = arith.mulf %192, %178 : vector<8x128xf32>
    %202 = arith.mulf %186, %194 : vector<8x128xf32>
    %203 = arith.addf %201, %202 : vector<8x128xf32>
    %204 = math.tanh %203 : vector<8x128xf32>
    %205 = arith.mulf %200, %204 : vector<8x128xf32>
    %c0_82 = arith.constant 0 : index
    %c0_83 = arith.constant 0 : index
    %206 = vector.load %arg8[%c0_82, %c0_83] : memref<8x128xf32, #tpu.memory_space<vmem>>, vector<8x128xf32>
    tpu.vector_store %arg8[%c0_82, %c0_83], %203 {strides = array<i32>} : memref<8x128xf32, #tpu.memory_space<vmem>>, vector<8x128xf32>,
    %c0_84 = arith.constant 0 : index
    %c0_85 = arith.constant 0 : index
    %207 = vector.load %arg7[%c0_84, %c0_85] : memref<8x128xf32, #tpu.memory_space<vmem>>, vector<8x128xf32>
    tpu.vector_store %arg7[%c0_84, %c0_85], %205 {strides = array<i32>} : memref<8x128xf32, #tpu.memory_space<vmem>>, vector<8x128xf32>,
    %c6_i32 = arith.constant 6 : i32
    %208 = arith.index_cast %c6_i32 : i32 to index
    %c0_86 = arith.constant 0 : index
    %c0_87 = arith.constant 0 : index
    %209 = vector.load %arg2[%208, %c0_86, %c0_87] : memref<8x8x512xf32, #tpu.memory_space<vmem>>, vector<1x8x512xf32>
    %210 = vector.shape_cast %209 : vector<1x8x512xf32> to vector<8x512xf32>
    %c0_88 = arith.constant 0 : index
    %c0_89 = arith.constant 0 : index
    %211 = vector.load %arg7[%c0_88, %c0_89] : memref<8x128xf32, #tpu.memory_space<vmem>>, vector<8x128xf32>
    %c0_90 = arith.constant 0 : index
    %c0_91 = arith.constant 0 : index
    %212 = vector.load %arg8[%c0_90, %c0_91] : memref<8x128xf32, #tpu.memory_space<vmem>>, vector<8x128xf32>
    %cst_92 = arith.constant dense<0.000000e+00> : vector<8x512xf32>
    %213 = tpu.matmul %211, %3, %cst_92 {dimension_numbers = #tpu.dot_dimension_numbers<[1], [0], [0], [1], [0, 0, 1, 1], [], []>} : vector<8x128xf32>, vector<128x512xf32>, vector<8x512xf32> -> vector<8x512xf32>
    %214 = arith.addf %210, %213 : vector<8x512xf32>
    %215 = vector.extract_strided_slice %214 {offsets = [0, 0], sizes = [8, 128], strides = [1, 1]} : vector<8x512xf32> to vector<8x128xf32>
    %216 = arith.negf %215 : vector<8x128xf32>
    %217 = math.exp %216 : vector<8x128xf32>
    %cst_93 = arith.constant 1.000000e+00 : f32
    %218 = vector.broadcast %cst_93 : f32 to vector<8x128xf32>
    %219 = arith.addf %218, %217 : vector<8x128xf32>
    %220 = arith.divf %218, %219 : vector<8x128xf32>
    %221 = vector.extract_strided_slice %214 {offsets = [0, 128], sizes = [8, 128], strides = [1, 1]} : vector<8x512xf32> to vector<8x128xf32>
    %222 = arith.negf %221 : vector<8x128xf32>
    %223 = math.exp %222 : vector<8x128xf32>
    %cst_94 = arith.constant 1.000000e+00 : f32
    %224 = vector.broadcast %cst_94 : f32 to vector<8x128xf32>
    %225 = arith.addf %224, %223 : vector<8x128xf32>
    %226 = arith.divf %224, %225 : vector<8x128xf32>
    %227 = vector.extract_strided_slice %214 {offsets = [0, 256], sizes = [8, 128], strides = [1, 1]} : vector<8x512xf32> to vector<8x128xf32>
    %228 = math.tanh %227 : vector<8x128xf32>
    %229 = vector.extract_strided_slice %214 {offsets = [0, 384], sizes = [8, 128], strides = [1, 1]} : vector<8x512xf32> to vector<8x128xf32>
    %230 = arith.negf %229 : vector<8x128xf32>
    %231 = math.exp %230 : vector<8x128xf32>
    %cst_95 = arith.constant 1.000000e+00 : f32
    %232 = vector.broadcast %cst_95 : f32 to vector<8x128xf32>
    %233 = arith.addf %232, %231 : vector<8x128xf32>
    %234 = arith.divf %232, %233 : vector<8x128xf32>
    %235 = arith.mulf %226, %212 : vector<8x128xf32>
    %236 = arith.mulf %220, %228 : vector<8x128xf32>
    %237 = arith.addf %235, %236 : vector<8x128xf32>
    %238 = math.tanh %237 : vector<8x128xf32>
    %239 = arith.mulf %234, %238 : vector<8x128xf32>
    %c0_96 = arith.constant 0 : index
    %c0_97 = arith.constant 0 : index
    %240 = vector.load %arg8[%c0_96, %c0_97] : memref<8x128xf32, #tpu.memory_space<vmem>>, vector<8x128xf32>
    tpu.vector_store %arg8[%c0_96, %c0_97], %237 {strides = array<i32>} : memref<8x128xf32, #tpu.memory_space<vmem>>, vector<8x128xf32>,
    %c0_98 = arith.constant 0 : index
    %c0_99 = arith.constant 0 : index
    %241 = vector.load %arg7[%c0_98, %c0_99] : memref<8x128xf32, #tpu.memory_space<vmem>>, vector<8x128xf32>
    tpu.vector_store %arg7[%c0_98, %c0_99], %239 {strides = array<i32>} : memref<8x128xf32, #tpu.memory_space<vmem>>, vector<8x128xf32>,
    %c7_i32 = arith.constant 7 : i32
    %242 = arith.index_cast %c7_i32 : i32 to index
    %c0_100 = arith.constant 0 : index
    %c0_101 = arith.constant 0 : index
    %243 = vector.load %arg2[%242, %c0_100, %c0_101] : memref<8x8x512xf32, #tpu.memory_space<vmem>>, vector<1x8x512xf32>
    %244 = vector.shape_cast %243 : vector<1x8x512xf32> to vector<8x512xf32>
    %c0_102 = arith.constant 0 : index
    %c0_103 = arith.constant 0 : index
    %245 = vector.load %arg7[%c0_102, %c0_103] : memref<8x128xf32, #tpu.memory_space<vmem>>, vector<8x128xf32>
    %c0_104 = arith.constant 0 : index
    %c0_105 = arith.constant 0 : index
    %246 = vector.load %arg8[%c0_104, %c0_105] : memref<8x128xf32, #tpu.memory_space<vmem>>, vector<8x128xf32>
    %cst_106 = arith.constant dense<0.000000e+00> : vector<8x512xf32>
    %247 = tpu.matmul %245, %3, %cst_106 {dimension_numbers = #tpu.dot_dimension_numbers<[1], [0], [0], [1], [0, 0, 1, 1], [], []>} : vector<8x128xf32>, vector<128x512xf32>, vector<8x512xf32> -> vector<8x512xf32>
    %248 = arith.addf %244, %247 : vector<8x512xf32>
    %249 = vector.extract_strided_slice %248 {offsets = [0, 0], sizes = [8, 128], strides = [1, 1]} : vector<8x512xf32> to vector<8x128xf32>
    %250 = arith.negf %249 : vector<8x128xf32>
    %251 = math.exp %250 : vector<8x128xf32>
    %cst_107 = arith.constant 1.000000e+00 : f32
    %252 = vector.broadcast %cst_107 : f32 to vector<8x128xf32>
    %253 = arith.addf %252, %251 : vector<8x128xf32>
    %254 = arith.divf %252, %253 : vector<8x128xf32>
    %255 = vector.extract_strided_slice %248 {offsets = [0, 128], sizes = [8, 128], strides = [1, 1]} : vector<8x512xf32> to vector<8x128xf32>
    %256 = arith.negf %255 : vector<8x128xf32>
    %257 = math.exp %256 : vector<8x128xf32>
    %cst_108 = arith.constant 1.000000e+00 : f32
    %258 = vector.broadcast %cst_108 : f32 to vector<8x128xf32>
    %259 = arith.addf %258, %257 : vector<8x128xf32>
    %260 = arith.divf %258, %259 : vector<8x128xf32>
    %261 = vector.extract_strided_slice %248 {offsets = [0, 256], sizes = [8, 128], strides = [1, 1]} : vector<8x512xf32> to vector<8x128xf32>
    %262 = math.tanh %261 : vector<8x128xf32>
    %263 = vector.extract_strided_slice %248 {offsets = [0, 384], sizes = [8, 128], strides = [1, 1]} : vector<8x512xf32> to vector<8x128xf32>
    %264 = arith.negf %263 : vector<8x128xf32>
    %265 = math.exp %264 : vector<8x128xf32>
    %cst_109 = arith.constant 1.000000e+00 : f32
    %266 = vector.broadcast %cst_109 : f32 to vector<8x128xf32>
    %267 = arith.addf %266, %265 : vector<8x128xf32>
    %268 = arith.divf %266, %267 : vector<8x128xf32>
    %269 = arith.mulf %260, %246 : vector<8x128xf32>
    %270 = arith.mulf %254, %262 : vector<8x128xf32>
    %271 = arith.addf %269, %270 : vector<8x128xf32>
    %272 = math.tanh %271 : vector<8x128xf32>
    %273 = arith.mulf %268, %272 : vector<8x128xf32>
    %c0_110 = arith.constant 0 : index
    %c0_111 = arith.constant 0 : index
    %274 = vector.load %arg8[%c0_110, %c0_111] : memref<8x128xf32, #tpu.memory_space<vmem>>, vector<8x128xf32>
    tpu.vector_store %arg8[%c0_110, %c0_111], %271 {strides = array<i32>} : memref<8x128xf32, #tpu.memory_space<vmem>>, vector<8x128xf32>,
    %c0_112 = arith.constant 0 : index
    %c0_113 = arith.constant 0 : index
    %275 = vector.load %arg7[%c0_112, %c0_113] : memref<8x128xf32, #tpu.memory_space<vmem>>, vector<8x128xf32>
    tpu.vector_store %arg7[%c0_112, %c0_113], %273 {strides = array<i32>} : memref<8x128xf32, #tpu.memory_space<vmem>>, vector<8x128xf32>,
    %c8_i32 = arith.constant 8 : i32
    %c0_i32_114 = arith.constant 0 : i32
    %276 = arith.cmpi eq, %arg1, %c0_i32_114 : i32
    %277 = arith.extui %276 : i1 to i32
    %c0_i32_115 = arith.constant 0 : i32
    %278 = arith.cmpi ne, %277, %c0_i32_115 : i32
    scf.if %278 {
      %c0_116 = arith.constant 0 : index
      %c0_117 = arith.constant 0 : index
      %279 = vector.load %arg7[%c0_116, %c0_117] : memref<8x128xf32, #tpu.memory_space<vmem>>, vector<8x128xf32>
      %c0_118 = arith.constant 0 : index
      %c0_119 = arith.constant 0 : index
      %280 = vector.load %arg4[%c0_118, %c0_119] : memref<8x128xf32, #tpu.memory_space<vmem>>, vector<8x128xf32>
      tpu.vector_store %arg4[%c0_118, %c0_119], %279 {strides = array<i32>} : memref<8x128xf32, #tpu.memory_space<vmem>>, vector<8x128xf32>,
    } else {
    }
    return
  }
  func.func @transform_0(%arg0: i32, %arg1: i32) -> (i32, i32, i32) {
    %c0_i32 = arith.constant 0 : i32
    %c0_i32_0 = arith.constant 0 : i32
    return %arg1, %arg0, %c0_i32 : i32, i32, i32
  }
  func.func @transform_2(%arg0: i32, %arg1: i32) -> (i32, i32) {
    %c0_i32 = arith.constant 0 : i32
    %c0_i32_0 = arith.constant 0 : i32
    return %arg0, %c0_i32 : i32, i32
  }
}

</mosaic_0001>

<bundles_post_ra>
// kernel: simple_lstm_forward.1
= control target key start
LH: loop header
LB: loop body
LE: loop exit
PB: predicated region body
PF: predicated region fallthrough
CT: control target
= control target key end

     0   :  { %s3205_s0 = inlined_call_operand.vmem [shape: f32[8,8,512], index: 0, kind: input, shape index: {}]   ;;  %s3206_s1 = inlined_call_operand.vmem [shape: f32[128,512], index: 1, kind: input, shape index: {}]   ;;  %s3207_s2 = inlined_call_operand.vmem [shape: f32[8,128], index: 2, kind: output, shape index: {}]  }
   0x1   :  { %v2420_v0 = vld [vmem:[%s3206_s1] sm:$0xff]  ;;  %v2425_v1 = vld [vmem:[%s3206_s1 + $0x8] sm:$0xff]  ;;  %v2430_v2 = vld [vmem:[%s3206_s1 + $0x10] sm:$0xff] }
   0x2   :  { %v2435_v3 = vld [vmem:[%s3206_s1 + $0x18] sm:$0xff]  ;;  %v53_v4 = vld [vmem:[%s3206_s1 + $0x20] sm:$0xff]  ;;  %v55_v5 = vld [vmem:[%s3206_s1 + $0x28] sm:$0xff] }
   0x3   :  { %v2446_v6 = vld [vmem:[%s3206_s1 + $0x30] sm:$0xff]  ;;  %v2451_v7 = vld [vmem:[%s3206_s1 + $0x38] sm:$0xff]  ;;  %v2456_v8 = vld [vmem:[%s3206_s1 + $0x40] sm:$0xff] }
   0x4   :  { %v63_v9 = vld [vmem:[%s3206_s1 + $0x48] sm:$0xff]  ;;  %v2464_v10 = vld [vmem:[%s3206_s1 + $0x50] sm:$0xff]  ;;  %v2469_v11 = vld [vmem:[%s3206_s1 + $0x58] sm:$0xff] }
   0x5   :  { %v69_v12 = vld [vmem:[%s3206_s1 + $0x60] sm:$0xff]  ;;  %v71_v13 = vld [vmem:[%s3206_s1 + $0x68] sm:$0xff]  ;;  %v2480_v14 = vld [vmem:[%s3206_s1 + $0x70] sm:$0xff] }
   0x6   :  { %v75_v15 = vld [vmem:[%s3206_s1 + $0x78] sm:$0xff]  ;;  %v2488_v16 = vld [vmem:[%s3206_s1 + $0x80] sm:$0xff]  ;;  %v79_v17 = vld [vmem:[%s3206_s1 + $0x88] sm:$0xff] }
   0x7   :  { %v2496_v18 = vld [vmem:[%s3206_s1 + $0x90] sm:$0xff]  ;;  %v2501_v19 = vld [vmem:[%s3206_s1 + $0x98] sm:$0xff]  ;;  %v2506_v20 = vld [vmem:[%s3206_s1 + $0xa0] sm:$0xff] }
   0x8   :  { %v87_v21 = vld [vmem:[%s3206_s1 + $0xa8] sm:$0xff]  ;;  %v2514_v22 = vld [vmem:[%s3206_s1 + $0xb0] sm:$0xff]  ;;  %v91_v23 = vld [vmem:[%s3206_s1 + $0xb8] sm:$0xff] }
   0x9   :  { %v2522_v24 = vld [vmem:[%s3206_s1 + $0xc0] sm:$0xff]  ;;  %v2527_v25 = vld [vmem:[%s3206_s1 + $0xc8] sm:$0xff]  ;;  %v2532_v26 = vld [vmem:[%s3206_s1 + $0xd0] sm:$0xff] }
   0xa   :  { %v2537_v27 = vld [vmem:[%s3206_s1 + $0xd8] sm:$0xff]  ;;  %v2542_v28 = vld [vmem:[%s3206_s1 + $0xe0] sm:$0xff]  ;;  %v103_v29 = vld [vmem:[%s3206_s1 + $0xe8] sm:$0xff] }
   0xb   :  { %v2550_v30 = vld [vmem:[%s3206_s1 + $0xf0] sm:$0xff]  ;;  %v107_v31 = vld [vmem:[%s3206_s1 + $0xf8] sm:$0xff]  ;;  %v2558_v32 = vld [vmem:[%s3206_s1 + $0x100] sm:$0xff] }
   0xc   :  { %v2563_v33 = vld [vmem:[%s3206_s1 + $0x108] sm:$0xff]  ;;  %v2568_v34 = vld [vmem:[%s3206_s1 + $0x110] sm:$0xff]  ;;  %v2573_v35 = vld [vmem:[%s3206_s1 + $0x118] sm:$0xff] }
   0xd   :  { %v2578_v36 = vld [vmem:[%s3206_s1 + $0x120] sm:$0xff]  ;;  %v119_v37 = vld [vmem:[%s3206_s1 + $0x128] sm:$0xff]  ;;  %v2586_v38 = vld [vmem:[%s3206_s1 + $0x130] sm:$0xff] }
   0xe   :  { %v123_v39 = vld [vmem:[%s3206_s1 + $0x138] sm:$0xff]  ;;  %v2594_v40 = vld [vmem:[%s3206_s1 + $0x140] sm:$0xff]  ;;  %v2599_v41 = vld [vmem:[%s3206_s1 + $0x148] sm:$0xff] }
   0xf   :  { %v2604_v42 = vld [vmem:[%s3206_s1 + $0x150] sm:$0xff]  ;;  %v2609_v43 = vld [vmem:[%s3206_s1 + $0x158] sm:$0xff]  ;;  %v2614_v44 = vld [vmem:[%s3206_s1 + $0x160] sm:$0xff] }
  0x10   :  { %v135_v45 = vld [vmem:[%s3206_s1 + $0x168] sm:$0xff]  ;;  %v2622_v46 = vld [vmem:[%s3206_s1 + $0x170] sm:$0xff]  ;;  %v139_v47 = vld [vmem:[%s3206_s1 + $0x178] sm:$0xff] }
  0x11   :  { %v2630_v48 = vld [vmem:[%s3206_s1 + $0x180] sm:$0xff]  ;;  %v2635_v49 = vld [vmem:[%s3206_s1 + $0x188] sm:$0xff]  ;;  %v2640_v50 = vld [vmem:[%s3206_s1 + $0x190] sm:$0xff] }
  0x12   :  { %v2645_v51 = vld [vmem:[%s3206_s1 + $0x198] sm:$0xff]  ;;  %v2650_v52 = vld [vmem:[%s3206_s1 + $0x1a0] sm:$0xff]  ;;  %v151_v53 = vld [vmem:[%s3206_s1 + $0x1a8] sm:$0xff] }
  0x13   :  { %v2658_v54 = vld [vmem:[%s3206_s1 + $0x1b0] sm:$0xff]  ;;  %v155_v55 = vld [vmem:[%s3206_s1 + $0x1b8] sm:$0xff]  ;;  %v2666_v56 = vld [vmem:[%s3206_s1 + $0x1c0] sm:$0xff] }
  0x14   :  { %3208 = vst [vmem:[#allocation8_spill] sm:$0xff] %v2666_v56  ;;  %v2671_v57 = vld [vmem:[%s3206_s1 + $0x1c8] sm:$0xff]  ;;  %v2676_v58 = vld [vmem:[%s3206_s1 + $0x1d0] sm:$0xff]  ;;  %v2681_v59 = vld [vmem:[%s3206_s1 + $0x1d8] sm:$0xff] }
  0x15   :  { %3209 = vst [vmem:[#allocation9_spill] sm:$0xff] %v2676_v58  ;;  %3210 = vst [vmem:[#allocation10_spill] sm:$0xff] %v2681_v59  ;;  %v2686_v60 = vld [vmem:[%s3206_s1 + $0x1e0] sm:$0xff]  ;;  %v167_v61 = vld [vmem:[%s3206_s1 + $0x1e8] sm:$0xff] }
  0x16   :  { %3211 = vst [vmem:[#allocation11_spill] sm:$0xff] %v2686_v60  ;;  %v2694_v62 = vld [vmem:[%s3206_s1 + $0x1f0] sm:$0xff]  ;;  %v171_v63 = vld [vmem:[%s3206_s1 + $0x1f8] sm:$0xff] }
  0x17   :  { %3212 = vst [vmem:[#allocation12_spill] sm:$0xff] %v2694_v62 }
  0x18   :  { %180 = vsyncadd [#allocation3], 8192  ;;  %v2700_v58 = vpack.c.bf16 %v55_v5, %v2425_v1  ;;  %v2703_v56 = vpack.c.bf16 %v53_v4, %v2420_v0  ;;  %v2705_v60 = vpack.c.bf16 %v71_v13, %v63_v9 }
  0x19   :  { %2399 = dma.done.wait [#allocation3], 8192 }
  0x1a   :  { %2400 = vsyncadd [#allocation3], 4294959104  ;;  %1759 = vmatprep.subr.bf16.mxu0 %v2700_v58  ;;  %v2710_v62 = vpack.c.bf16 %v2451_v7, %v2435_v3  ;;  %v2714_v59 = vpack.c.bf16 %v2446_v6, %v2430_v2  ;;  %v2718_v1 = vpack.c.bf16 %v69_v12, %v2456_v8  ;;  %v2721_v0 = vpack.c.bf16 %v75_v15, %v2469_v11 }
  0x1b   :  { %1761 = vmatpush1.bf16.msra.mxu0 %v2703_v56  ;;  %v2724_v4 = vpack.c.bf16 %v87_v21, %v79_v17  ;;  %v2730_v2 = vpack.c.bf16 %v2480_v14, %v2464_v10  ;;  %v2734_v3 = vpack.c.bf16 %v91_v23, %v2501_v19  ;;  %v2401_v5 = vmov 0.0  }
  0x1c   :  { %1763 = vmatprep.subr.bf16.mxu0 %v2705_v60  ;;  %1791 = vmatprep.subr.bf16.mxu1 %v2710_v62  ;;  %v2740_v6 = vpack.c.bf16 %v2506_v20, %v2488_v16  ;;  %v2744_v7 = vpack.c.bf16 %v103_v29, %v2527_v25  ;;  %v2750_v8 = vpack.c.bf16 %v2514_v22, %v2496_v18  ;;  %v3213_v25 = vld [vmem:[#allocation10_spill] sm:$0xff] }
  0x1d   :  { %1793 = vmatpush1.bf16.msra.mxu1 %v2714_v59  ;;  %321 = vmatprep.mubr.f32.mxu0 %v2401_v5  ;;  %v2754_v9 = vpack.c.bf16 %v107_v31, %v2537_v27  ;;  %v2759_v10 = vpack.c.bf16 %v2542_v28, %v2522_v24  ;;  %v2763_v11 = vpack.c.bf16 %v119_v37, %v2563_v33  ;;  %v3214_v27 = vld [vmem:[#allocation8_spill] sm:$0xff]  ;;  %v3215_v28 = vld [vmem:[#allocation11_spill] sm:$0xff] }
  0x1e   :  { %1795 = vmatprep.subr.bf16.mxu1 %v2721_v0  ;;  %392 = vmatprep.mubr.f32.mxu1 %v2401_v5  ;;  %v2768_v12 = vpack.c.bf16 %v2550_v30, %v2532_v26  ;;  %v2772_v13 = vpack.c.bf16 %v123_v39, %v2573_v35  ;;  %v2777_v14 = vpack.c.bf16 %v2578_v36, %v2558_v32  ;;  %v3216_v30 = vld [vmem:[#allocation9_spill] sm:$0xff]  ;;  %v3217_v31 = vld [vmem:[#allocation12_spill] sm:$0xff] }
  0x1f   :  { %1765 = vmatpush1.bf16.msra.mxu0 %v2718_v1  ;;  %v2781_v15 = vpack.c.bf16 %v135_v45, %v2599_v41  ;;  %v2786_v16 = vpack.c.bf16 %v2586_v38, %v2568_v34  ;;  %v2790_v17 = vpack.c.bf16 %v139_v47, %v2609_v43  ;;  %v2795_v18 = vpack.c.bf16 %v2614_v44, %v2594_v40  ;;  %v251_v33 = vld [vmem:[%s3205_s0] sm:$0xff]  ;;  %v252_v34 = vld [vmem:[%s3205_s0 + $0x8] sm:$0xff]  ;;  %v254_v43 = vld [vmem:[%s3205_s0 + $0x18] sm:$0xff] }
  0x20   :  { %1767 = vmatprep.subr.bf16.mxu0 %v2724_v4  ;;  %v2799_v19 = vpack.c.bf16 %v151_v53, %v2635_v49  ;;  %v2804_v20 = vpack.c.bf16 %v2622_v46, %v2604_v42  ;;  %v2808_v21 = vpack.c.bf16 %v155_v55, %v2645_v51  ;;  %v2813_v22 = vpack.c.bf16 %v2650_v52, %v2630_v48  ;;  %v253_v45 = vld [vmem:[%s3205_s0 + $0x10] sm:$0xff] }
  0x21   :  { %1797 = vmatpush1.bf16.msra.mxu1 %v2730_v2  ;;  %v2817_v23 = vpack.c.bf16 %v167_v61, %v2671_v57  ;;  %v2822_v24 = vpack.c.bf16 %v2658_v54, %v2640_v50  ;;  %v2826_v26 = vpack.c.bf16 %v171_v63, %v3213_v25  ;;  %v2831_v29 = vpack.c.bf16 %v3215_v28, %v3214_v27 }
  0x22   :  { %1799 = vmatprep.subr.bf16.mxu1 %v2734_v3  ;;  %v2837_v32 = vpack.c.bf16 %v3217_v31, %v3216_v30  ;;  %v1708_v31 = vld [vmem:[%s3205_s0 + $0x20] sm:$0xff] }
  0x23   :  { %1769 = vmatpush1.bf16.msra.mxu0 %v2740_v6 }
  0x24   :  { %1771 = vmatprep.subr.bf16.mxu0 %v2744_v7 }
  0x25   :  { %1801 = vmatpush1.bf16.msra.mxu1 %v2750_v8 }
  0x26   :  { %1803 = vmatprep.subr.bf16.mxu1 %v2754_v9 }
  0x27   :  { %1773 = vmatpush1.bf16.msra.mxu0 %v2759_v10 }
  0x28   :  { %1775 = vmatprep.subr.bf16.mxu0 %v2763_v11 }
  0x29   :  { %1805 = vmatpush1.bf16.msra.mxu1 %v2768_v12 }
  0x2a   :  { %1807 = vmatprep.subr.bf16.mxu1 %v2772_v13 }
  0x2b   :  { %1777 = vmatpush1.bf16.msra.mxu0 %v2777_v14 }
  0x2c   :  { %1779 = vmatprep.subr.bf16.mxu0 %v2781_v15 }
  0x2d   :  { %1809 = vmatpush1.bf16.msra.mxu1 %v2786_v16 }
  0x2e   :  { %1811 = vmatprep.subr.bf16.mxu1 %v2790_v17 }
  0x2f   :  { %1781 = vmatpush1.bf16.msra.mxu0 %v2795_v18 }
  0x30   :  { %1783 = vmatprep.subr.bf16.mxu0 %v2799_v19 }
  0x31   :  { %1813 = vmatpush1.bf16.msra.mxu1 %v2804_v20 }
  0x32   :  { %1815 = vmatprep.subr.bf16.mxu1 %v2808_v21 }
  0x33   :  { %1785 = vmatpush1.bf16.msra.mxu0 %v2813_v22 }
  0x34   :  { %1787 = vmatprep.subr.bf16.mxu0 %v2817_v23 }
  0x35   :  { %1817 = vmatpush1.bf16.msra.mxu1 %v2822_v24 }
  0x36   :  { %1819 = vmatprep.subr.bf16.mxu1 %v2826_v26 }
  0x37   :  { %1789 = vmatpush1.bf16.msra.mxu0 %v2831_v29 }
  0x38   :  { %1823 = vmatprep.subr.bf16.mxu0 %v2700_v58 }
  0x39   :  { %1821 = vmatpush1.bf16.msra.mxu1 %v2837_v32 }
  0x3a   :  { %322 = vmatmul.mubr.f32.vlgmr.msra.gmra.mrb[0].mxu0 %v2401_v5  ;;  %1855 = vmatprep.subr.bf16.mxu1 %v2710_v62 }
  0x3b   :  { %1825 = vmatpush1.bf16.msra.mxu0 %v2703_v56  ;;  %500 = vmatprep.mubr.f32.mxu0 %v2401_v5 }
  0x3c   :  { %393 = vmatmul.mubr.f32.vlgmr.msra.gmra.mrb[0].mxu1 %v2401_v5  ;;  %1827 = vmatprep.subr.bf16.mxu0 %v2705_v60 }
  0x3d   :  { %1857 = vmatpush1.bf16.msra.mxu1 %v2714_v59  ;;  %571 = vmatprep.mubr.f32.mxu1 %v2401_v5 }
  0x3e   :  { %1859 = vmatprep.subr.bf16.mxu1 %v2721_v0 }
  0x3f   :  { %1829 = vmatpush1.bf16.msra.mxu0 %v2718_v1 }
  0x40   :  { %1831 = vmatprep.subr.bf16.mxu0 %v2724_v4 }
  0x41   :  { %1861 = vmatpush1.bf16.msra.mxu1 %v2730_v2 }
  0x42   :  { %1863 = vmatprep.subr.bf16.mxu1 %v2734_v3 }
  0x43   :  { %1833 = vmatpush1.bf16.msra.mxu0 %v2740_v6 }
  0x44   :  { %1835 = vmatprep.subr.bf16.mxu0 %v2744_v7 }
  0x45   :  { %1865 = vmatpush1.bf16.msra.mxu1 %v2750_v8 }
  0x46   :  { %1867 = vmatprep.subr.bf16.mxu1 %v2754_v9 }
  0x47   :  { %1837 = vmatpush1.bf16.msra.mxu0 %v2759_v10 }
  0x48   :  { %1839 = vmatprep.subr.bf16.mxu0 %v2763_v11 }
  0x49   :  { %1869 = vmatpush1.bf16.msra.mxu1 %v2768_v12 }
  0x4a   :  { %1871 = vmatprep.subr.bf16.mxu1 %v2772_v13 }
  0x4b   :  { %1841 = vmatpush1.bf16.msra.mxu0 %v2777_v14 }
  0x4c   :  { %1843 = vmatprep.subr.bf16.mxu0 %v2781_v15 }
  0x4d   :  { %1873 = vmatpush1.bf16.msra.mxu1 %v2786_v16 }
  0x4e   :  { %1875 = vmatprep.subr.bf16.mxu1 %v2790_v17 }
  0x4f   :  { %1845 = vmatpush1.bf16.msra.mxu0 %v2795_v18 }
  0x50   :  { %1847 = vmatprep.subr.bf16.mxu0 %v2799_v19 }
  0x51   :  { %1877 = vmatpush1.bf16.msra.mxu1 %v2804_v20 }
  0x52   :  { %1879 = vmatprep.subr.bf16.mxu1 %v2808_v21 }
  0x53   :  { %1849 = vmatpush1.bf16.msra.mxu0 %v2813_v22 }
  0x54   :  { %1851 = vmatprep.subr.bf16.mxu0 %v2817_v23 }
  0x55   :  { %1881 = vmatpush1.bf16.msra.mxu1 %v2822_v24 }
  0x56   :  { %1883 = vmatprep.subr.bf16.mxu1 %v2826_v26 }
  0x57   :  { %1853 = vmatpush1.bf16.msra.mxu0 %v2831_v29 }
  0x58   :  { %1887 = vmatprep.subr.bf16.mxu0 %v2700_v58 }
  0x59   :  { %1885 = vmatpush1.bf16.msra.mxu1 %v2837_v32 }
  0x5a   :  { %1919 = vmatprep.subr.bf16.mxu1 %v2710_v62 }
 0x10d   :  { %v323_v35 = vpop.f32.mrb[0].mxu0 }
 0x10e   :  { %v399_v36 = vadd.f32 %v323_v35, %v251_v33  ;;  %v325_v37 = vpop.f32.mrb[1].mxu0  ;;  %v1709_v33 = vld [vmem:[%s3205_s0 + $0x28] sm:$0xff] }
 0x10f   :  { %v400_v38 = vadd.f32 %v325_v37, %v252_v34  ;;  %v394_v39 = vpop.f32.mrb[0].mxu1 }
 0x110   :  { %v1705_v40 = vmul.f32 -1.442695, %v399_v36  ;;  %v396_v41 = vpop.f32.mrb[1].mxu1  ;;  %v401_v47 = vadd.f32 %v394_v39, %v253_v45 }
 0x111   :  { %v1706_v42 = vmul.f32 -1.442695, %v400_v38  ;;  %v402_v44 = vadd.f32 %v396_v41, %v254_v43 }
 0x112   :  { %2271 = vpow2.f32 %v1705_v40 }
 0x113   :  { %2273 = vpow2.f32 %v1706_v42  ;;  %v1707_v46 = vmul.f32 -1.442695, %v402_v44  ;;  %v1711_v42 = vld [vmem:[%s3205_s0 + $0x38] sm:$0xff]  ;;  %v1710_v44 = vld [vmem:[%s3205_s0 + $0x30] sm:$0xff] }
 0x115   :  { %2275 = vpow2.f32 %v1707_v46 }
 0x116   :  { %2277 = vtanh.f32 %v401_v47 }
 0x11c   :  { %v2272_v48 = vpop.eup %2271 }
 0x11d   :  { %v2274_v49 = vpop.eup %2273  ;;  %v406_v50 = vadd.f32 1.0, %v2272_v48 }
 0x11e   :  { %v412_v51 = vadd.f32 1.0, %v2274_v49 }
 0x11f   :  { %2279 = vrcp.f32 %v406_v50  ;;  %v2276_v52 = vpop.eup %2275 }
 0x120   :  { %2281 = vrcp.f32 %v412_v51  ;;  %v2278_v53 = vpop.eup %2277  ;;  %v419_v55 = vadd.f32 1.0, %v2276_v52 }
 0x122   :  { %2283 = vrcp.f32 %v419_v55 }
 0x129   :  { %v2280_v54 = vpop.eup %2279 }
 0x12a   :  { %v2282_v57 = vpop.eup %2281  ;;  %v423_v61 = vmul.f32 %v2280_v54, %v2278_v53 }
 0x12b   :  { %v422_v63 = vmul.f32 0.0, %v2282_v57 }
 0x12c   :  { %v2284_v27 = vpop.eup %2283 }
 0x12d   :  { %v2892_v25 = vadd.f32 %v423_v61, %v422_v63 }
 0x12f   :  { %2285 = vtanh.f32 %v2892_v25 }
 0x139   :  { %v2286_v28 = vpop.eup %2285 }
 0x13a   :  { %v426_v30 = vmul.f32 %v2286_v28, %v2284_v27 }
 0x13c   :  { %501 = vmatmul.mubr.f32.vlgmr.msra.gmra.mrb[2].mxu0 %v426_v30  ;;  %572 = vmatmul.mubr.f32.vlgmr.msra.gmra.mrb[2].mxu1 %v426_v30 }
 0x13d   :  { %1889 = vmatpush1.bf16.msra.mxu0 %v2703_v56  ;;  %1921 = vmatpush1.bf16.msra.mxu1 %v2714_v59 }
 0x13e   :  { %1891 = vmatprep.subr.bf16.mxu0 %v2705_v60  ;;  %1923 = vmatprep.subr.bf16.mxu1 %v2721_v0 }
 0x13f   :  { %679 = vmatprep.mubr.f32.mxu0 %v2401_v5  ;;  %750 = vmatprep.mubr.f32.mxu1 %v2401_v5 }
 0x141   :  { %1893 = vmatpush1.bf16.msra.mxu0 %v2718_v1  ;;  %1925 = vmatpush1.bf16.msra.mxu1 %v2730_v2 }
 0x142   :  { %1895 = vmatprep.subr.bf16.mxu0 %v2724_v4  ;;  %1927 = vmatprep.subr.bf16.mxu1 %v2734_v3 }
 0x145   :  { %1897 = vmatpush1.bf16.msra.mxu0 %v2740_v6  ;;  %1929 = vmatpush1.bf16.msra.mxu1 %v2750_v8 }
 0x146   :  { %1899 = vmatprep.subr.bf16.mxu0 %v2744_v7  ;;  %1931 = vmatprep.subr.bf16.mxu1 %v2754_v9 }
 0x149   :  { %1901 = vmatpush1.bf16.msra.mxu0 %v2759_v10  ;;  %1933 = vmatpush1.bf16.msra.mxu1 %v2768_v12 }
 0x14a   :  { %1903 = vmatprep.subr.bf16.mxu0 %v2763_v11  ;;  %1935 = vmatprep.subr.bf16.mxu1 %v2772_v13 }
 0x14d   :  { %1905 = vmatpush1.bf16.msra.mxu0 %v2777_v14  ;;  %1937 = vmatpush1.bf16.msra.mxu1 %v2786_v16 }
 0x14e   :  { %1907 = vmatprep.subr.bf16.mxu0 %v2781_v15  ;;  %1939 = vmatprep.subr.bf16.mxu1 %v2790_v17 }
 0x151   :  { %1909 = vmatpush1.bf16.msra.mxu0 %v2795_v18  ;;  %1941 = vmatpush1.bf16.msra.mxu1 %v2804_v20 }
 0x152   :  { %1911 = vmatprep.subr.bf16.mxu0 %v2799_v19  ;;  %1943 = vmatprep.subr.bf16.mxu1 %v2808_v21 }
 0x155   :  { %1913 = vmatpush1.bf16.msra.mxu0 %v2813_v22  ;;  %1945 = vmatpush1.bf16.msra.mxu1 %v2822_v24 }
 0x156   :  { %1915 = vmatprep.subr.bf16.mxu0 %v2817_v23  ;;  %1947 = vmatprep.subr.bf16.mxu1 %v2826_v26 }
 0x159   :  { %1917 = vmatpush1.bf16.msra.mxu0 %v2831_v29  ;;  %1949 = vmatpush1.bf16.msra.mxu1 %v2837_v32 }
 0x15a   :  { %1951 = vmatprep.subr.bf16.mxu0 %v2700_v58  ;;  %1983 = vmatprep.subr.bf16.mxu1 %v2710_v62 }
 0x20f   :  { %v502_v34 = vpop.f32.mrb[2].mxu0  ;;  %v573_v35 = vpop.f32.mrb[2].mxu1 }
 0x210   :  { %v578_v36 = vadd.f32 %v1708_v31, %v502_v34  ;;  %v504_v37 = vpop.f32.mrb[3].mxu0  ;;  %v575_v38 = vpop.f32.mrb[3].mxu1  ;;  %v580_v46 = vadd.f32 %v1710_v44, %v573_v35  ;;  %v1716_v31 = vld [vmem:[%s3205_s0 + $0x48] sm:$0xff] }
 0x211   :  { %v579_v39 = vadd.f32 %v1709_v33, %v504_v37  ;;  %v581_v43 = vadd.f32 %v1711_v42, %v575_v38 }
 0x212   :  { %v1712_v40 = vmul.f32 -1.442695, %v578_v36 }
 0x213   :  { %v1713_v41 = vmul.f32 -1.442695, %v579_v39  ;;  %v1714_v45 = vmul.f32 -1.442695, %v581_v43  ;;  %v1717_v43 = vld [vmem:[%s3205_s0 + $0x50] sm:$0xff] }
 0x214   :  { %2287 = vpow2.f32 %v1712_v40 }
 0x215   :  { %2289 = vpow2.f32 %v1713_v41  ;;  %v1718_v41 = vld [vmem:[%s3205_s0 + $0x58] sm:$0xff] }
 0x216   :  { %2291 = vpow2.f32 %v1714_v45 }
 0x217   :  { %2293 = vtanh.f32 %v580_v46 }
 0x21e   :  { %v2288_v47 = vpop.eup %2287 }
 0x21f   :  { %v2290_v48 = vpop.eup %2289  ;;  %v585_v49 = vadd.f32 1.0, %v2288_v47 }
 0x220   :  { %v591_v50 = vadd.f32 1.0, %v2290_v48  ;;  %v2292_v51 = vpop.eup %2291 }
 0x221   :  { %2295 = vrcp.f32 %v585_v49  ;;  %v2294_v52 = vpop.eup %2293  ;;  %v598_v57 = vadd.f32 1.0, %v2292_v51 }
 0x222   :  { %2297 = vrcp.f32 %v591_v50 }
 0x223   :  { %2299 = vrcp.f32 %v598_v57 }
 0x22b   :  { %v2296_v53 = vpop.eup %2295 }
 0x22c   :  { %v2298_v54 = vpop.eup %2297  ;;  %v602_v55 = vmul.f32 %v2296_v53, %v2294_v52 }
 0x22d   :  { %v601_v61 = vmul.f32 %v2298_v54, %v2892_v25  ;;  %v2300_v27 = vpop.eup %2299  ;;  %v1715_v25 = vld [vmem:[%s3205_s0 + $0x40] sm:$0xff] }
 0x22f   :  { %v2942_v63 = vadd.f32 %v602_v55, %v601_v61 }
 0x231   :  { %2301 = vtanh.f32 %v2942_v63 }
 0x23b   :  { %v2302_v28 = vpop.eup %2301 }
 0x23c   :  { %v605_v30 = vmul.f32 %v2302_v28, %v2300_v27 }
 0x23e   :  { %680 = vmatmul.mubr.f32.vlgmr.msra.gmra.mrb[4].mxu0 %v605_v30  ;;  %751 = vmatmul.mubr.f32.vlgmr.msra.gmra.mrb[4].mxu1 %v605_v30 }
 0x23f   :  { %1953 = vmatpush1.bf16.msra.mxu0 %v2703_v56  ;;  %1985 = vmatpush1.bf16.msra.mxu1 %v2714_v59 }
 0x240   :  { %1955 = vmatprep.subr.bf16.mxu0 %v2705_v60  ;;  %1987 = vmatprep.subr.bf16.mxu1 %v2721_v0 }
 0x241   :  { %858 = vmatprep.mubr.f32.mxu0 %v2401_v5  ;;  %929 = vmatprep.mubr.f32.mxu1 %v2401_v5 }
 0x243   :  { %1957 = vmatpush1.bf16.msra.mxu0 %v2718_v1  ;;  %1989 = vmatpush1.bf16.msra.mxu1 %v2730_v2 }
 0x244   :  { %1959 = vmatprep.subr.bf16.mxu0 %v2724_v4  ;;  %1991 = vmatprep.subr.bf16.mxu1 %v2734_v3 }
 0x247   :  { %1961 = vmatpush1.bf16.msra.mxu0 %v2740_v6  ;;  %1993 = vmatpush1.bf16.msra.mxu1 %v2750_v8 }
 0x248   :  { %1963 = vmatprep.subr.bf16.mxu0 %v2744_v7  ;;  %1995 = vmatprep.subr.bf16.mxu1 %v2754_v9 }
 0x24b   :  { %1965 = vmatpush1.bf16.msra.mxu0 %v2759_v10  ;;  %1997 = vmatpush1.bf16.msra.mxu1 %v2768_v12 }
 0x24c   :  { %1967 = vmatprep.subr.bf16.mxu0 %v2763_v11  ;;  %1999 = vmatprep.subr.bf16.mxu1 %v2772_v13 }
 0x24f   :  { %1969 = vmatpush1.bf16.msra.mxu0 %v2777_v14  ;;  %2001 = vmatpush1.bf16.msra.mxu1 %v2786_v16 }
 0x250   :  { %1971 = vmatprep.subr.bf16.mxu0 %v2781_v15  ;;  %2003 = vmatprep.subr.bf16.mxu1 %v2790_v17 }
 0x253   :  { %1973 = vmatpush1.bf16.msra.mxu0 %v2795_v18  ;;  %2005 = vmatpush1.bf16.msra.mxu1 %v2804_v20 }
 0x254   :  { %1975 = vmatprep.subr.bf16.mxu0 %v2799_v19  ;;  %2007 = vmatprep.subr.bf16.mxu1 %v2808_v21 }
 0x257   :  { %1977 = vmatpush1.bf16.msra.mxu0 %v2813_v22  ;;  %2009 = vmatpush1.bf16.msra.mxu1 %v2822_v24 }
 0x258   :  { %1979 = vmatprep.subr.bf16.mxu0 %v2817_v23  ;;  %2011 = vmatprep.subr.bf16.mxu1 %v2826_v26 }
 0x25b   :  { %1981 = vmatpush1.bf16.msra.mxu0 %v2831_v29  ;;  %2013 = vmatpush1.bf16.msra.mxu1 %v2837_v32 }
 0x25c   :  { %2015 = vmatprep.subr.bf16.mxu0 %v2700_v58  ;;  %2047 = vmatprep.subr.bf16.mxu1 %v2710_v62 }
 0x311   :  { %v681_v33 = vpop.f32.mrb[4].mxu0  ;;  %v752_v34 = vpop.f32.mrb[4].mxu1 }
 0x312   :  { %v757_v35 = vadd.f32 %v1715_v25, %v681_v33  ;;  %v683_v36 = vpop.f32.mrb[5].mxu0  ;;  %v754_v37 = vpop.f32.mrb[5].mxu1  ;;  %v759_v45 = vadd.f32 %v1717_v43, %v752_v34  ;;  %v1723_v25 = vld [vmem:[%s3205_s0 + $0x68] sm:$0xff] }
 0x313   :  { %v758_v38 = vadd.f32 %v1716_v31, %v683_v36  ;;  %v760_v42 = vadd.f32 %v1718_v41, %v754_v37 }
 0x314   :  { %v1719_v39 = vmul.f32 -1.442695, %v757_v35 }
 0x315   :  { %v1720_v40 = vmul.f32 -1.442695, %v758_v38  ;;  %v1721_v44 = vmul.f32 -1.442695, %v760_v42  ;;  %v1724_v42 = vld [vmem:[%s3205_s0 + $0x70] sm:$0xff] }
 0x316   :  { %2303 = vpow2.f32 %v1719_v39 }
 0x317   :  { %2305 = vpow2.f32 %v1720_v40  ;;  %v1725_v40 = vld [vmem:[%s3205_s0 + $0x78] sm:$0xff] }
 0x318   :  { %2307 = vpow2.f32 %v1721_v44 }
 0x319   :  { %2309 = vtanh.f32 %v759_v45 }
 0x320   :  { %v2304_v46 = vpop.eup %2303 }
 0x321   :  { %v2306_v47 = vpop.eup %2305  ;;  %v764_v48 = vadd.f32 1.0, %v2304_v46 }
 0x322   :  { %v770_v49 = vadd.f32 1.0, %v2306_v47  ;;  %v2308_v50 = vpop.eup %2307 }
 0x323   :  { %2311 = vrcp.f32 %v764_v48  ;;  %v2310_v51 = vpop.eup %2309  ;;  %v777_v55 = vadd.f32 1.0, %v2308_v50 }
 0x324   :  { %2313 = vrcp.f32 %v770_v49 }
 0x325   :  { %2315 = vrcp.f32 %v777_v55 }
 0x32d   :  { %v2312_v52 = vpop.eup %2311 }
 0x32e   :  { %v2314_v53 = vpop.eup %2313  ;;  %v781_v54 = vmul.f32 %v2312_v52, %v2310_v51 }
 0x32f   :  { %v780_v57 = vmul.f32 %v2314_v53, %v2942_v63  ;;  %v2316_v27 = vpop.eup %2315  ;;  %v1722_v63 = vld [vmem:[%s3205_s0 + $0x60] sm:$0xff] }
 0x331   :  { %v2992_v61 = vadd.f32 %v781_v54, %v780_v57 }
 0x333   :  { %2317 = vtanh.f32 %v2992_v61 }
 0x33d   :  { %v2318_v28 = vpop.eup %2317 }
 0x33e   :  { %v784_v30 = vmul.f32 %v2318_v28, %v2316_v27 }
 0x340   :  { %859 = vmatmul.mubr.f32.vlgmr.msra.gmra.mrb[6].mxu0 %v784_v30  ;;  %930 = vmatmul.mubr.f32.vlgmr.msra.gmra.mrb[6].mxu1 %v784_v30 }
 0x341   :  { %2017 = vmatpush1.bf16.msra.mxu0 %v2703_v56  ;;  %2049 = vmatpush1.bf16.msra.mxu1 %v2714_v59 }
 0x342   :  { %2019 = vmatprep.subr.bf16.mxu0 %v2705_v60  ;;  %2051 = vmatprep.subr.bf16.mxu1 %v2721_v0 }
 0x343   :  { %1037 = vmatprep.mubr.f32.mxu0 %v2401_v5  ;;  %1108 = vmatprep.mubr.f32.mxu1 %v2401_v5 }
 0x345   :  { %2021 = vmatpush1.bf16.msra.mxu0 %v2718_v1  ;;  %2053 = vmatpush1.bf16.msra.mxu1 %v2730_v2 }
 0x346   :  { %2023 = vmatprep.subr.bf16.mxu0 %v2724_v4  ;;  %2055 = vmatprep.subr.bf16.mxu1 %v2734_v3 }
 0x349   :  { %2025 = vmatpush1.bf16.msra.mxu0 %v2740_v6  ;;  %2057 = vmatpush1.bf16.msra.mxu1 %v2750_v8 }
 0x34a   :  { %2027 = vmatprep.subr.bf16.mxu0 %v2744_v7  ;;  %2059 = vmatprep.subr.bf16.mxu1 %v2754_v9 }
 0x34d   :  { %2029 = vmatpush1.bf16.msra.mxu0 %v2759_v10  ;;  %2061 = vmatpush1.bf16.msra.mxu1 %v2768_v12 }
 0x34e   :  { %2031 = vmatprep.subr.bf16.mxu0 %v2763_v11  ;;  %2063 = vmatprep.subr.bf16.mxu1 %v2772_v13 }
 0x351   :  { %2033 = vmatpush1.bf16.msra.mxu0 %v2777_v14  ;;  %2065 = vmatpush1.bf16.msra.mxu1 %v2786_v16 }
 0x352   :  { %2035 = vmatprep.subr.bf16.mxu0 %v2781_v15  ;;  %2067 = vmatprep.subr.bf16.mxu1 %v2790_v17 }
 0x355   :  { %2037 = vmatpush1.bf16.msra.mxu0 %v2795_v18  ;;  %2069 = vmatpush1.bf16.msra.mxu1 %v2804_v20 }
 0x356   :  { %2039 = vmatprep.subr.bf16.mxu0 %v2799_v19  ;;  %2071 = vmatprep.subr.bf16.mxu1 %v2808_v21 }
 0x359   :  { %2041 = vmatpush1.bf16.msra.mxu0 %v2813_v22  ;;  %2073 = vmatpush1.bf16.msra.mxu1 %v2822_v24 }
 0x35a   :  { %2043 = vmatprep.subr.bf16.mxu0 %v2817_v23  ;;  %2075 = vmatprep.subr.bf16.mxu1 %v2826_v26 }
 0x35d   :  { %2045 = vmatpush1.bf16.msra.mxu0 %v2831_v29  ;;  %2077 = vmatpush1.bf16.msra.mxu1 %v2837_v32 }
 0x35e   :  { %2079 = vmatprep.subr.bf16.mxu0 %v2700_v58  ;;  %2111 = vmatprep.subr.bf16.mxu1 %v2710_v62 }
 0x413   :  { %v860_v31 = vpop.f32.mrb[6].mxu0  ;;  %v931_v33 = vpop.f32.mrb[6].mxu1 }
 0x414   :  { %v936_v34 = vadd.f32 %v1722_v63, %v860_v31  ;;  %v862_v35 = vpop.f32.mrb[7].mxu0  ;;  %v933_v36 = vpop.f32.mrb[7].mxu1  ;;  %v938_v44 = vadd.f32 %v1724_v42, %v931_v33  ;;  %v1730_v63 = vld [vmem:[%s3205_s0 + $0x88] sm:$0xff] }
 0x415   :  { %v937_v37 = vadd.f32 %v1723_v25, %v862_v35  ;;  %v939_v41 = vadd.f32 %v1725_v40, %v933_v36 }
 0x416   :  { %v1726_v38 = vmul.f32 -1.442695, %v936_v34 }
 0x417   :  { %v1727_v39 = vmul.f32 -1.442695, %v937_v37  ;;  %v1728_v43 = vmul.f32 -1.442695, %v939_v41  ;;  %v1731_v41 = vld [vmem:[%s3205_s0 + $0x90] sm:$0xff] }
 0x418   :  { %2319 = vpow2.f32 %v1726_v38 }
 0x419   :  { %2321 = vpow2.f32 %v1727_v39  ;;  %v1732_v39 = vld [vmem:[%s3205_s0 + $0x98] sm:$0xff] }
 0x41a   :  { %2323 = vpow2.f32 %v1728_v43 }
 0x41b   :  { %2325 = vtanh.f32 %v938_v44 }
 0x422   :  { %v2320_v45 = vpop.eup %2319 }
 0x423   :  { %v2322_v46 = vpop.eup %2321  ;;  %v943_v47 = vadd.f32 1.0, %v2320_v45 }
 0x424   :  { %v949_v48 = vadd.f32 1.0, %v2322_v46  ;;  %v2324_v49 = vpop.eup %2323 }
 0x425   :  { %2327 = vrcp.f32 %v943_v47  ;;  %v2326_v50 = vpop.eup %2325  ;;  %v956_v54 = vadd.f32 1.0, %v2324_v49 }
 0x426   :  { %2329 = vrcp.f32 %v949_v48 }
 0x427   :  { %2331 = vrcp.f32 %v956_v54 }
 0x42f   :  { %v2328_v51 = vpop.eup %2327 }
 0x430   :  { %v2330_v52 = vpop.eup %2329  ;;  %v960_v53 = vmul.f32 %v2328_v51, %v2326_v50 }
 0x431   :  { %v959_v55 = vmul.f32 %v2330_v52, %v2992_v61  ;;  %v2332_v27 = vpop.eup %2331  ;;  %v1729_v61 = vld [vmem:[%s3205_s0 + $0x80] sm:$0xff] }
 0x433   :  { %v3042_v57 = vadd.f32 %v960_v53, %v959_v55 }
 0x435   :  { %2333 = vtanh.f32 %v3042_v57 }
 0x43f   :  { %v2334_v28 = vpop.eup %2333 }
 0x440   :  { %v963_v30 = vmul.f32 %v2334_v28, %v2332_v27 }
 0x442   :  { %1038 = vmatmul.mubr.f32.vlgmr.msra.gmra.mrb[8].mxu0 %v963_v30  ;;  %1109 = vmatmul.mubr.f32.vlgmr.msra.gmra.mrb[8].mxu1 %v963_v30 }
 0x443   :  { %2081 = vmatpush1.bf16.msra.mxu0 %v2703_v56  ;;  %2113 = vmatpush1.bf16.msra.mxu1 %v2714_v59 }
 0x444   :  { %2083 = vmatprep.subr.bf16.mxu0 %v2705_v60  ;;  %2115 = vmatprep.subr.bf16.mxu1 %v2721_v0 }
 0x445   :  { %1216 = vmatprep.mubr.f32.mxu0 %v2401_v5  ;;  %1287 = vmatprep.mubr.f32.mxu1 %v2401_v5 }
 0x447   :  { %2085 = vmatpush1.bf16.msra.mxu0 %v2718_v1  ;;  %2117 = vmatpush1.bf16.msra.mxu1 %v2730_v2 }
 0x448   :  { %2087 = vmatprep.subr.bf16.mxu0 %v2724_v4  ;;  %2119 = vmatprep.subr.bf16.mxu1 %v2734_v3 }
 0x44b   :  { %2089 = vmatpush1.bf16.msra.mxu0 %v2740_v6  ;;  %2121 = vmatpush1.bf16.msra.mxu1 %v2750_v8 }
 0x44c   :  { %2091 = vmatprep.subr.bf16.mxu0 %v2744_v7  ;;  %2123 = vmatprep.subr.bf16.mxu1 %v2754_v9 }
 0x44f   :  { %2093 = vmatpush1.bf16.msra.mxu0 %v2759_v10  ;;  %2125 = vmatpush1.bf16.msra.mxu1 %v2768_v12 }
 0x450   :  { %2095 = vmatprep.subr.bf16.mxu0 %v2763_v11  ;;  %2127 = vmatprep.subr.bf16.mxu1 %v2772_v13 }
 0x453   :  { %2097 = vmatpush1.bf16.msra.mxu0 %v2777_v14  ;;  %2129 = vmatpush1.bf16.msra.mxu1 %v2786_v16 }
 0x454   :  { %2099 = vmatprep.subr.bf16.mxu0 %v2781_v15  ;;  %2131 = vmatprep.subr.bf16.mxu1 %v2790_v17 }
 0x457   :  { %2101 = vmatpush1.bf16.msra.mxu0 %v2795_v18  ;;  %2133 = vmatpush1.bf16.msra.mxu1 %v2804_v20 }
 0x458   :  { %2103 = vmatprep.subr.bf16.mxu0 %v2799_v19  ;;  %2135 = vmatprep.subr.bf16.mxu1 %v2808_v21 }
 0x45b   :  { %2105 = vmatpush1.bf16.msra.mxu0 %v2813_v22  ;;  %2137 = vmatpush1.bf16.msra.mxu1 %v2822_v24 }
 0x45c   :  { %2107 = vmatprep.subr.bf16.mxu0 %v2817_v23  ;;  %2139 = vmatprep.subr.bf16.mxu1 %v2826_v26 }
 0x45f   :  { %2109 = vmatpush1.bf16.msra.mxu0 %v2831_v29  ;;  %2141 = vmatpush1.bf16.msra.mxu1 %v2837_v32 }
 0x460   :  { %2143 = vmatprep.subr.bf16.mxu0 %v2700_v58  ;;  %2175 = vmatprep.subr.bf16.mxu1 %v2710_v62 }
 0x515   :  { %v1039_v25 = vpop.f32.mrb[8].mxu0  ;;  %v1110_v31 = vpop.f32.mrb[8].mxu1 }
 0x516   :  { %v1115_v33 = vadd.f32 %v1729_v61, %v1039_v25  ;;  %v1041_v34 = vpop.f32.mrb[9].mxu0  ;;  %v1112_v35 = vpop.f32.mrb[9].mxu1  ;;  %v1117_v43 = vadd.f32 %v1731_v41, %v1110_v31  ;;  %v1737_v61 = vld [vmem:[%s3205_s0 + $0xa8] sm:$0xff] }
 0x517   :  { %v1116_v36 = vadd.f32 %v1730_v63, %v1041_v34  ;;  %v1118_v40 = vadd.f32 %v1732_v39, %v1112_v35 }
 0x518   :  { %v1733_v37 = vmul.f32 -1.442695, %v1115_v33 }
 0x519   :  { %v1734_v38 = vmul.f32 -1.442695, %v1116_v36  ;;  %v1735_v42 = vmul.f32 -1.442695, %v1118_v40 }
 0x51a   :  { %2335 = vpow2.f32 %v1733_v37 }
 0x51b   :  { %2337 = vpow2.f32 %v1734_v38  ;;  %v1738_v38 = vld [vmem:[%s3205_s0 + $0xb0] sm:$0xff] }
 0x51c   :  { %2339 = vpow2.f32 %v1735_v42 }
 0x51d   :  { %2341 = vtanh.f32 %v1117_v43 }
 0x524   :  { %v2336_v44 = vpop.eup %2335 }
 0x525   :  { %v2338_v45 = vpop.eup %2337  ;;  %v1122_v46 = vadd.f32 1.0, %v2336_v44 }
 0x526   :  { %v1128_v47 = vadd.f32 1.0, %v2338_v45  ;;  %v2340_v48 = vpop.eup %2339 }
 0x527   :  { %2343 = vrcp.f32 %v1122_v46  ;;  %v2342_v49 = vpop.eup %2341  ;;  %v1135_v53 = vadd.f32 1.0, %v2340_v48 }
 0x528   :  { %2345 = vrcp.f32 %v1128_v47 }
 0x529   :  { %2347 = vrcp.f32 %v1135_v53 }
 0x531   :  { %v2344_v50 = vpop.eup %2343 }
 0x532   :  { %v2346_v51 = vpop.eup %2345  ;;  %v1139_v52 = vmul.f32 %v2344_v50, %v2342_v49 }
 0x533   :  { %v1138_v54 = vmul.f32 %v2346_v51, %v3042_v57  ;;  %v2348_v27 = vpop.eup %2347  ;;  %v1736_v57 = vld [vmem:[%s3205_s0 + $0xa0] sm:$0xff] }
 0x535   :  { %v3092_v55 = vadd.f32 %v1139_v52, %v1138_v54 }
 0x537   :  { %2349 = vtanh.f32 %v3092_v55 }
 0x541   :  { %v2350_v28 = vpop.eup %2349 }
 0x542   :  { %v1142_v30 = vmul.f32 %v2350_v28, %v2348_v27 }
 0x544   :  { %1217 = vmatmul.mubr.f32.vlgmr.msra.gmra.mrb[10].mxu0 %v1142_v30  ;;  %1288 = vmatmul.mubr.f32.vlgmr.msra.gmra.mrb[10].mxu1 %v1142_v30 }
 0x545   :  { %2145 = vmatpush1.bf16.msra.mxu0 %v2703_v56  ;;  %2177 = vmatpush1.bf16.msra.mxu1 %v2714_v59 }
 0x546   :  { %2147 = vmatprep.subr.bf16.mxu0 %v2705_v60  ;;  %2179 = vmatprep.subr.bf16.mxu1 %v2721_v0 }
 0x547   :  { %1395 = vmatprep.mubr.f32.mxu0 %v2401_v5  ;;  %1466 = vmatprep.mubr.f32.mxu1 %v2401_v5 }
 0x549   :  { %2149 = vmatpush1.bf16.msra.mxu0 %v2718_v1  ;;  %2181 = vmatpush1.bf16.msra.mxu1 %v2730_v2 }
 0x54a   :  { %2151 = vmatprep.subr.bf16.mxu0 %v2724_v4  ;;  %2183 = vmatprep.subr.bf16.mxu1 %v2734_v3 }
 0x54d   :  { %2153 = vmatpush1.bf16.msra.mxu0 %v2740_v6  ;;  %2185 = vmatpush1.bf16.msra.mxu1 %v2750_v8 }
 0x54e   :  { %2155 = vmatprep.subr.bf16.mxu0 %v2744_v7  ;;  %2187 = vmatprep.subr.bf16.mxu1 %v2754_v9 }
 0x551   :  { %2157 = vmatpush1.bf16.msra.mxu0 %v2759_v10  ;;  %2189 = vmatpush1.bf16.msra.mxu1 %v2768_v12 }
 0x552   :  { %2159 = vmatprep.subr.bf16.mxu0 %v2763_v11  ;;  %2191 = vmatprep.subr.bf16.mxu1 %v2772_v13 }
 0x555   :  { %2161 = vmatpush1.bf16.msra.mxu0 %v2777_v14  ;;  %2193 = vmatpush1.bf16.msra.mxu1 %v2786_v16 }
 0x556   :  { %2163 = vmatprep.subr.bf16.mxu0 %v2781_v15  ;;  %2195 = vmatprep.subr.bf16.mxu1 %v2790_v17 }
 0x559   :  { %2165 = vmatpush1.bf16.msra.mxu0 %v2795_v18  ;;  %2197 = vmatpush1.bf16.msra.mxu1 %v2804_v20 }
 0x55a   :  { %2167 = vmatprep.subr.bf16.mxu0 %v2799_v19  ;;  %2199 = vmatprep.subr.bf16.mxu1 %v2808_v21 }
 0x55d   :  { %2169 = vmatpush1.bf16.msra.mxu0 %v2813_v22  ;;  %2201 = vmatpush1.bf16.msra.mxu1 %v2822_v24 }
 0x55e   :  { %2171 = vmatprep.subr.bf16.mxu0 %v2817_v23  ;;  %2203 = vmatprep.subr.bf16.mxu1 %v2826_v26 }
 0x561   :  { %2173 = vmatpush1.bf16.msra.mxu0 %v2831_v29  ;;  %2205 = vmatpush1.bf16.msra.mxu1 %v2837_v32 }
 0x562   :  { %2207 = vmatprep.subr.bf16.mxu0 %v2700_v58  ;;  %2239 = vmatprep.subr.bf16.mxu1 %v2710_v62  ;;  %v1739_v58 = vld [vmem:[%s3205_s0 + $0xb8] sm:$0xff] }
 0x617   :  { %v1218_v63 = vpop.f32.mrb[10].mxu0  ;;  %v1289_v25 = vpop.f32.mrb[10].mxu1 }
 0x618   :  { %v1294_v31 = vadd.f32 %v1736_v57, %v1218_v63  ;;  %v1220_v33 = vpop.f32.mrb[11].mxu0  ;;  %v1291_v34 = vpop.f32.mrb[11].mxu1  ;;  %v1296_v40 = vadd.f32 %v1738_v38, %v1289_v25 }
 0x619   :  { %v1295_v35 = vadd.f32 %v1737_v61, %v1220_v33  ;;  %v1297_v62 = vadd.f32 %v1739_v58, %v1291_v34  ;;  %v1753_v34 = vld [vmem:[%s3205_s0 + $0xf8] sm:$0xff] }
 0x61a   :  { %v1740_v36 = vmul.f32 -1.442695, %v1294_v31 }
 0x61b   :  { %v1741_v37 = vmul.f32 -1.442695, %v1295_v35  ;;  %v1742_v39 = vmul.f32 -1.442695, %v1297_v62 }
 0x61c   :  { %2351 = vpow2.f32 %v1740_v36  ;;  %v1752_v36 = vld [vmem:[%s3205_s0 + $0xf0] sm:$0xff] }
 0x61d   :  { %2353 = vpow2.f32 %v1741_v37 }
 0x61e   :  { %2355 = vpow2.f32 %v1742_v39 }
 0x61f   :  { %2357 = vtanh.f32 %v1296_v40 }
 0x626   :  { %v2352_v41 = vpop.eup %2351 }
 0x627   :  { %v2354_v42 = vpop.eup %2353  ;;  %v1301_v43 = vadd.f32 1.0, %v2352_v41 }
 0x628   :  { %v1307_v44 = vadd.f32 1.0, %v2354_v42  ;;  %v2356_v45 = vpop.eup %2355 }
 0x629   :  { %2359 = vrcp.f32 %v1301_v43  ;;  %v2358_v46 = vpop.eup %2357  ;;  %v1314_v50 = vadd.f32 1.0, %v2356_v45 }
 0x62a   :  { %2361 = vrcp.f32 %v1307_v44 }
 0x62b   :  { %2363 = vrcp.f32 %v1314_v50 }
 0x633   :  { %v2360_v47 = vpop.eup %2359 }
 0x634   :  { %v2362_v48 = vpop.eup %2361  ;;  %v1318_v49 = vmul.f32 %v2360_v47, %v2358_v46 }
 0x635   :  { %v1317_v51 = vmul.f32 %v2362_v48, %v3092_v55  ;;  %v2364_v53 = vpop.eup %2363  ;;  %v1751_v55 = vld [vmem:[%s3205_s0 + $0xe8] sm:$0xff] }
 0x637   :  { %v3142_v52 = vadd.f32 %v1318_v49, %v1317_v51 }
 0x639   :  { %2365 = vtanh.f32 %v3142_v52 }
 0x643   :  { %v2366_v54 = vpop.eup %2365 }
 0x644   :  { %v1321_v27 = vmul.f32 %v2366_v54, %v2364_v53 }
 0x646   :  { %1396 = vmatmul.mubr.f32.vlgmr.msra.gmra.mrb[12].mxu0 %v1321_v27  ;;  %1467 = vmatmul.mubr.f32.vlgmr.msra.gmra.mrb[12].mxu1 %v1321_v27 }
 0x647   :  { %2209 = vmatpush1.bf16.msra.mxu0 %v2703_v56  ;;  %2241 = vmatpush1.bf16.msra.mxu1 %v2714_v59  ;;  %v1743_v56 = vld [vmem:[%s3205_s0 + $0xc0] sm:$0xff]  ;;  %v1744_v59 = vld [vmem:[%s3205_s0 + $0xc8] sm:$0xff] }
 0x648   :  { %2211 = vmatprep.subr.bf16.mxu0 %v2705_v60  ;;  %2243 = vmatprep.subr.bf16.mxu1 %v2721_v0 }
 0x649   :  { %1574 = vmatprep.mubr.f32.mxu0 %v2401_v5  ;;  %1645 = vmatprep.mubr.f32.mxu1 %v2401_v5 }
 0x64b   :  { %2213 = vmatpush1.bf16.msra.mxu0 %v2718_v1  ;;  %2245 = vmatpush1.bf16.msra.mxu1 %v2730_v2 }
 0x64c   :  { %2215 = vmatprep.subr.bf16.mxu0 %v2724_v4  ;;  %2247 = vmatprep.subr.bf16.mxu1 %v2734_v3 }
 0x64f   :  { %2217 = vmatpush1.bf16.msra.mxu0 %v2740_v6  ;;  %2249 = vmatpush1.bf16.msra.mxu1 %v2750_v8 }
 0x650   :  { %2219 = vmatprep.subr.bf16.mxu0 %v2744_v7  ;;  %2251 = vmatprep.subr.bf16.mxu1 %v2754_v9  ;;  %v1746_v7 = vld [vmem:[%s3205_s0 + $0xd8] sm:$0xff]  ;;  %v1745_v9 = vld [vmem:[%s3205_s0 + $0xd0] sm:$0xff] }
 0x653   :  { %2221 = vmatpush1.bf16.msra.mxu0 %v2759_v10  ;;  %2253 = vmatpush1.bf16.msra.mxu1 %v2768_v12 }
 0x654   :  { %2223 = vmatprep.subr.bf16.mxu0 %v2763_v11  ;;  %2255 = vmatprep.subr.bf16.mxu1 %v2772_v13 }
 0x657   :  { %2225 = vmatpush1.bf16.msra.mxu0 %v2777_v14  ;;  %2257 = vmatpush1.bf16.msra.mxu1 %v2786_v16 }
 0x658   :  { %2227 = vmatprep.subr.bf16.mxu0 %v2781_v15  ;;  %2259 = vmatprep.subr.bf16.mxu1 %v2790_v17 }
 0x65b   :  { %2229 = vmatpush1.bf16.msra.mxu0 %v2795_v18  ;;  %2261 = vmatpush1.bf16.msra.mxu1 %v2804_v20 }
 0x65c   :  { %2231 = vmatprep.subr.bf16.mxu0 %v2799_v19  ;;  %2263 = vmatprep.subr.bf16.mxu1 %v2808_v21 }
 0x65f   :  { %2233 = vmatpush1.bf16.msra.mxu0 %v2813_v22  ;;  %2265 = vmatpush1.bf16.msra.mxu1 %v2822_v24 }
 0x660   :  { %2235 = vmatprep.subr.bf16.mxu0 %v2817_v23  ;;  %2267 = vmatprep.subr.bf16.mxu1 %v2826_v26 }
 0x663   :  { %2237 = vmatpush1.bf16.msra.mxu0 %v2831_v29  ;;  %2269 = vmatpush1.bf16.msra.mxu1 %v2837_v32  ;;  %v1750_v32 = vld [vmem:[%s3205_s0 + $0xe0] sm:$0xff] }
 0x719   :  { %v1397_v60 = vpop.f32.mrb[12].mxu0  ;;  %v1468_v1 = vpop.f32.mrb[12].mxu1 }
 0x71a   :  { %v1473_v0 = vadd.f32 %v1743_v56, %v1397_v60  ;;  %v1399_v4 = vpop.f32.mrb[13].mxu0  ;;  %v1470_v2 = vpop.f32.mrb[13].mxu1  ;;  %v1475_v11 = vadd.f32 %v1745_v9, %v1468_v1 }
 0x71b   :  { %v1474_v3 = vadd.f32 %v1744_v59, %v1399_v4  ;;  %v1476_v8 = vadd.f32 %v1746_v7, %v1470_v2 }
 0x71c   :  { %v1747_v5 = vmul.f32 -1.442695, %v1473_v0 }
 0x71d   :  { %v1748_v6 = vmul.f32 -1.442695, %v1474_v3  ;;  %v1749_v10 = vmul.f32 -1.442695, %v1476_v8 }
 0x71e   :  { %2367 = vpow2.f32 %v1747_v5 }
 0x71f   :  { %2369 = vpow2.f32 %v1748_v6 }
 0x720   :  { %2371 = vpow2.f32 %v1749_v10 }
 0x721   :  { %2373 = vtanh.f32 %v1475_v11 }
 0x728   :  { %v2368_v12 = vpop.eup %2367 }
 0x729   :  { %v2370_v13 = vpop.eup %2369  ;;  %v1480_v14 = vadd.f32 1.0, %v2368_v12 }
 0x72a   :  { %v1486_v15 = vadd.f32 1.0, %v2370_v13  ;;  %v2372_v16 = vpop.eup %2371 }
 0x72b   :  { %2375 = vrcp.f32 %v1480_v14  ;;  %v2374_v17 = vpop.eup %2373  ;;  %v1493_v21 = vadd.f32 1.0, %v2372_v16 }
 0x72c   :  { %2377 = vrcp.f32 %v1486_v15 }
 0x72d   :  { %2379 = vrcp.f32 %v1493_v21 }
 0x735   :  { %v2376_v18 = vpop.eup %2375 }
 0x736   :  { %v2378_v19 = vpop.eup %2377  ;;  %v1497_v20 = vmul.f32 %v2376_v18, %v2374_v17 }
 0x737   :  { %v1496_v22 = vmul.f32 %v2378_v19, %v3142_v52  ;;  %v2380_v24 = vpop.eup %2379 }
 0x739   :  { %v1498_v23 = vadd.f32 %v1497_v20, %v1496_v22 }
 0x73b   :  { %2381 = vtanh.f32 %v1498_v23 }
 0x745   :  { %v2382_v26 = vpop.eup %2381 }
 0x746   :  { %v1500_v29 = vmul.f32 %v2382_v26, %v2380_v24 }
 0x748   :  { %1575 = vmatmul.mubr.f32.vlgmr.msra.gmra.mrb[14].mxu0 %v1500_v29  ;;  %1646 = vmatmul.mubr.f32.vlgmr.msra.gmra.mrb[14].mxu1 %v1500_v29 }
 0x81b   :  { %v1576_v28 = vpop.f32.mrb[14].mxu0  ;;  %v1647_v30 = vpop.f32.mrb[14].mxu1 }
 0x81c   :  { %v1652_v57 = vadd.f32 %v1750_v32, %v1576_v28  ;;  %v1578_v61 = vpop.f32.mrb[15].mxu0  ;;  %v1649_v63 = vpop.f32.mrb[15].mxu1  ;;  %v1654_v58 = vadd.f32 %v1752_v36, %v1647_v30 }
 0x81d   :  { %v1653_v25 = vadd.f32 %v1751_v55, %v1578_v61  ;;  %v1655_v35 = vadd.f32 %v1753_v34, %v1649_v63 }
 0x81e   :  { %v1754_v31 = vmul.f32 -1.442695, %v1652_v57 }
 0x81f   :  { %v1755_v33 = vmul.f32 -1.442695, %v1653_v25  ;;  %v1756_v37 = vmul.f32 -1.442695, %v1655_v35 }
 0x820   :  { %2383 = vpow2.f32 %v1754_v31 }
 0x821   :  { %2385 = vpow2.f32 %v1755_v33 }
 0x822   :  { %2387 = vpow2.f32 %v1756_v37 }
 0x823   :  { %2389 = vtanh.f32 %v1654_v58 }
 0x82a   :  { %v2384_v62 = vpop.eup %2383 }
 0x82b   :  { %v2386_v38 = vpop.eup %2385  ;;  %v1659_v39 = vadd.f32 1.0, %v2384_v62 }
 0x82c   :  { %v1665_v40 = vadd.f32 1.0, %v2386_v38  ;;  %v2388_v41 = vpop.eup %2387 }
 0x82d   :  { %2391 = vrcp.f32 %v1659_v39  ;;  %v2390_v42 = vpop.eup %2389  ;;  %v1672_v46 = vadd.f32 1.0, %v2388_v41 }
 0x82e   :  { %2393 = vrcp.f32 %v1665_v40 }
 0x82f   :  { %2395 = vrcp.f32 %v1672_v46 }
 0x837   :  { %v2392_v43 = vpop.eup %2391 }
 0x838   :  { %v2394_v44 = vpop.eup %2393  ;;  %v1676_v45 = vmul.f32 %v2392_v43, %v2390_v42 }
 0x839   :  { %v1675_v47 = vmul.f32 %v2394_v44, %v1498_v23  ;;  %v2396_v49 = vpop.eup %2395 }
 0x83b   :  { %v1677_v48 = vadd.f32 %v1676_v45, %v1675_v47 }
 0x83d   :  { %2397 = vtanh.f32 %v1677_v48 }
 0x847   :  { %v2398_v50 = vpop.eup %2397 }
 0x848   :  { %v1679_v51 = vmul.f32 %v2398_v50, %v2396_v49 }
 0x84a   :  { %1686 = vst [vmem:[%s3207_s2] sm:$0xff] %v1679_v51 }
 0x84b   :  { %1691 = vsyncmov [#allocation3] }
 0x84e   :  { %s1692_s3 = vpop.sfrf %1691 }
 0x84f   :  { %p1757_p0 = scmp.ne.s32.totalorder %s1692_s3, 0 }
 0x851   :  { %1696 = shalt.err (%p1757_p0)  }

</bundles_post_ra>
